<compile_context>
chip_gen: v7x
topology: tpu7x:2x2x1
jax: 0.10.0
libtpu: 0.0.40
codegen_flags: <defaults>
</compile_context>

<pallas_src>
import functools

import jax
import jax.numpy as jnp
from jax.experimental import pallas as pl
from jax.experimental.pallas import tpu as pltpu


def _round_up(x, m):
    return ((x + m - 1) // m) * m


def _pick_row_tile(h, target):
    """Largest divisor of h that is <= target (>=1)."""
    t = min(h, max(1, target))
    while h % t != 0:
        t -= 1
    return t


def _conv_block_kernel(x_ref, w_ref, b_ref, o_ref, *, TH, W, KH, KW, apply_relu):
    # x_ref: (1, 1, TH + 2p, W + 2p, Cin_p)   padded row slab (with halo rows)
    # w_ref: (KH*KW*Cin_p, Cout_p)            taps folded into the contraction dim
    # b_ref: (1, Cout_p)                      f32 bias
    # o_ref: (1, TH, W, Cout_p)
    xs = x_ref[0, 0]                          # (TH+2p, Wp, Cin_p)
    cin_p = xs.shape[-1]
    cout_p = o_ref.shape[-1]

    # im2col: KH*KW shifted views concatenated along the (128-lane-aligned) channel
    # axis -> a single MXU matmul with K = KH*KW*Cin_p.
    taps = []
    for kh in range(KH):
        for kw in range(KW):
            taps.append(xs[kh:kh + TH, kw:kw + W, :])
    patches = jnp.concatenate(taps, axis=-1)                    # (TH, W, KH*KW*Cin_p)
    patches = patches.reshape(TH * W, KH * KW * cin_p)          # layout-preserving (128-lane last dim)

    acc = jnp.dot(patches, w_ref[...],
                  preferred_element_type=jnp.float32)           # (TH*W, Cout_p), f32 acc
    acc = acc + b_ref[...]                                      # f32 epilogue
    if apply_relu:
        acc = jnp.maximum(acc, 0.0)
    o_ref[0] = acc.reshape(TH, W, cout_p).astype(o_ref.dtype)


def conv_block_forward_nhwc(x_nhwc, weight_oihw, bias, *, padding=1, apply_relu=True,
                            compute_dtype=None, out_dtype=None, row_tile=8,
                            channel_align=128):
    """ConvBlock forward on NHWC activations. Returns NHWC output (unpadded channels)."""
    N, H, W, Cin = x_nhwc.shape
    Cout, Cin_w, KH, KW = weight_oihw.shape
    assert Cin_w == Cin, "channel mismatch"
    assert KH == KW and padding == (KH - 1) // 2, \
        "kernel implements stride=1, padding=(kernel_size-1)//2"

    out_dtype = out_dtype or x_nhwc.dtype
    cdt = compute_dtype or x_nhwc.dtype

    Cin_p = _round_up(Cin, channel_align)
    Cout_p = _round_up(Cout, channel_align)
    TH = _pick_row_tile(H, row_tile)
    R = H // TH
    Wp = W + 2 * padding
    K = KH * KW * Cin_p

    # Spatial + channel zero-pad (one fused XLA pad).
    xp = jnp.pad(x_nhwc.astype(cdt),
                 ((0, 0), (padding, padding), (padding, padding), (0, Cin_p - Cin)))

    # Pre-slice overlapping row slabs (halo = `padding` rows top/bottom) so each grid
    # step maps onto a plain, non-overlapping block -> auto-pipelined BlockSpec DMA.
    # Halo duplication overhead is only 2*padding / TH rows.
    slabs = jnp.stack([xp[:, r * TH: r * TH + TH + 2 * padding] for r in range(R)],
                      axis=1)                                   # (N, R, TH+2p, Wp, Cin_p)

    # OIHW -> HWIO, zero-pad channels, flatten (kh, kw, ci) into the contraction dim.
    w_hwio = jnp.transpose(weight_oihw, (2, 3, 1, 0))
    w_hwio = jnp.pad(w_hwio, ((0, 0), (0, 0), (0, Cin_p - Cin), (0, Cout_p - Cout)))
    w_flat = w_hwio.astype(cdt).reshape(K, Cout_p)
    b_pad = jnp.pad(bias.astype(jnp.float32), (0, Cout_p - Cout)).reshape(1, Cout_p)

    kernel = functools.partial(_conv_block_kernel, TH=TH, W=W, KH=KH, KW=KW,
                               apply_relu=apply_relu)

    out = pl.pallas_call(
        kernel,
        out_shape=jax.ShapeDtypeStruct((N, H, W, Cout_p), out_dtype),
        grid_spec=pltpu.PrefetchScalarGridSpec(
            num_scalar_prefetch=0,
            grid=(N, R),
            in_specs=[
                pl.BlockSpec((1, 1, TH + 2 * padding, Wp, Cin_p),
                             lambda n, r: (n, r, 0, 0, 0)),
                # Grid-constant index maps: weights/bias are DMA'd once and stay resident.
                pl.BlockSpec((K, Cout_p), lambda n, r: (0, 0)),
                pl.BlockSpec((1, Cout_p), lambda n, r: (0, 0)),
            ],
            out_specs=pl.BlockSpec((1, TH, W, Cout_p), lambda n, r: (n, r, 0, 0)),
        ),
        compiler_params=pltpu.CompilerParams(
            dimension_semantics=("parallel", "parallel"),
            vmem_limit_bytes=48 * 1024 * 1024,   # stays well under v7x's 64 MiB / TC
        ),
    )(slabs, w_flat, b_pad)

    return out[..., :Cout]                                       # strip channel padding


def conv_block_forward(x_nchw, weight_oihw, bias, *, padding=1, apply_relu=True,
                       compute_dtype=None, out_dtype=None, row_tile=8,
                       channel_align=128):
    """PyTorch-facing (NCHW) ConvBlock forward. Prefer the NHWC entry point when the
    surrounding model can keep activations channels-last (avoids the two transposes)."""
    x_nhwc = jnp.transpose(x_nchw, (0, 2, 3, 1))
    out_nhwc = conv_block_forward_nhwc(
        x_nhwc, weight_oihw, bias, padding=padding, apply_relu=apply_relu,
        compute_dtype=compute_dtype, out_dtype=out_dtype, row_tile=row_tile,
        channel_align=channel_align)
    return jnp.transpose(out_nhwc, (0, 3, 1, 2))


def init_conv_block_params(key, inc, outc, kernel_size=3):
    """Mimic ConvBlock.__init__: kaiming_uniform_ weight, zero bias."""
    fan_in = inc * kernel_size * kernel_size
    gain = 2.0 ** 0.5                        # torch default leaky_relu(a=0) gain
    bound = gain * (3.0 / fan_in) ** 0.5
    w = jax.random.uniform(key, (outc, inc, kernel_size, kernel_size),
                           dtype=jnp.float32, minval=-bound, maxval=bound)
    b = jnp.zeros((outc,), dtype=jnp.float32)
    return w, b


def _ref_conv_block(x, w, b, *, padding=1, relu=True):
    y = jax.lax.conv_general_dilated(
        x, w, window_strides=(1, 1), padding=((padding, padding), (padding, padding)),
        dimension_numbers=("NCHW", "OIHW", "NCHW"))
    y = y + b.reshape(1, -1, 1, 1)
    return jnp.maximum(y, 0.0) if relu else y


if __name__ == "__main__":
    key = jax.random.PRNGKey(0)
    kx, kw, kb = jax.random.split(key, 3)

    N, Cin, H, W = 2, 4, 16, 16
    Cout = 8

    x = jax.random.normal(kx, (N, Cin, H, W), dtype=jnp.float32)
    weight, bias = init_conv_block_params(kw, Cin, Cout, kernel_size=3)

    # 1) Module-faithful (zero-bias) f32 run.
    out = conv_block_forward(x, weight, bias, padding=1, apply_relu=True)
    out = jax.block_until_ready(out)
    ref = _ref_conv_block(x, weight, bias, padding=1, relu=True)
    assert out.shape == (N, Cout, H, W)
    assert jnp.allclose(out, ref, atol=1e-4, rtol=1e-4)

    # 2) Non-zero bias path (same forward semantics).
    bias2 = 0.1 * jax.random.normal(kb, (Cout,), dtype=jnp.float32)
    out2 = conv_block_forward(x, weight, bias2)
    ref2 = _ref_conv_block(x, weight, bias2)
    assert jnp.allclose(out2, ref2, atol=1e-4, rtol=1e-4)

    # 3) bf16 compute (v6e/v7x MXU path), f32 accumulation + f32 output.
    out_bf = conv_block_forward(x, weight, bias2, compute_dtype=jnp.bfloat16,
                                out_dtype=jnp.float32)
    ref_bf = _ref_conv_block(x.astype(jnp.bfloat16).astype(jnp.float32),
                             weight.astype(jnp.bfloat16).astype(jnp.float32), bias2)
    assert jnp.allclose(out_bf, ref_bf, atol=5e-3, rtol=5e-3)

    print("KERNEL_OK")
</pallas_src>

<mosaic_0001>
module attributes {stable_mosaic.version = 11 : i64} {
  func.func @_conv_block_kernel(%arg0: i32, %arg1: i32, %arg2: memref<1x1x10x18x128xf32, #tpu.memory_space<vmem>>, %arg3: memref<1152x128xf32, #tpu.memory_space<vmem>>, %arg4: memref<1x128xf32, #tpu.memory_space<vmem>>, %arg5: memref<1x8x16x128xf32, #tpu.memory_space<vmem>>) attributes {dimension_semantics = [#tpu.dimension_semantics<parallel>, #tpu.dimension_semantics<parallel>], iteration_bounds = array<i64: 2, 2>, scalar_prefetch = 0 : i64, scratch_operands = 0 : i64, tpu.core_type = #tpu.core_type<tc>, window_params = [{transform_indices = @transform_0, window_bounds = array<i64: 1, 1, 10, 18, 128>}, {pipeline_mode = #tpu.pipeline_mode<synchronous>, transform_indices = @transform_1, window_bounds = array<i64: 1152, 128>}, {pipeline_mode = #tpu.pipeline_mode<synchronous>, transform_indices = @transform_2, window_bounds = array<i64: 1, 128>}, {transform_indices = @transform_3, window_bounds = array<i64: 1, 8, 16, 128>}]} {
    %c0 = arith.constant 0 : index
    %c0_0 = arith.constant 0 : index
    %c0_1 = arith.constant 0 : index
    %c0_2 = arith.constant 0 : index
    %c0_3 = arith.constant 0 : index
    %0 = vector.load %arg2[%c0, %c0_0, %c0_1, %c0_2, %c0_3] : memref<1x1x10x18x128xf32, #tpu.memory_space<vmem>>, vector<1x1x10x18x128xf32>
    %1 = vector.shape_cast %0 : vector<1x1x10x18x128xf32> to vector<10x18x128xf32>
    %2 = vector.extract_strided_slice %1 {offsets = [0, 0, 0], sizes = [8, 16, 128], strides = [1, 1, 1]} : vector<10x18x128xf32> to vector<8x16x128xf32>
    %3 = vector.extract_strided_slice %1 {offsets = [0, 1, 0], sizes = [8, 16, 128], strides = [1, 1, 1]} : vector<10x18x128xf32> to vector<8x16x128xf32>
    %4 = vector.extract_strided_slice %1 {offsets = [0, 2, 0], sizes = [8, 16, 128], strides = [1, 1, 1]} : vector<10x18x128xf32> to vector<8x16x128xf32>
    %5 = vector.extract_strided_slice %1 {offsets = [1, 0, 0], sizes = [8, 16, 128], strides = [1, 1, 1]} : vector<10x18x128xf32> to vector<8x16x128xf32>
    %6 = vector.extract_strided_slice %1 {offsets = [1, 1, 0], sizes = [8, 16, 128], strides = [1, 1, 1]} : vector<10x18x128xf32> to vector<8x16x128xf32>
    %7 = vector.extract_strided_slice %1 {offsets = [1, 2, 0], sizes = [8, 16, 128], strides = [1, 1, 1]} : vector<10x18x128xf32> to vector<8x16x128xf32>
    %8 = vector.extract_strided_slice %1 {offsets = [2, 0, 0], sizes = [8, 16, 128], strides = [1, 1, 1]} : vector<10x18x128xf32> to vector<8x16x128xf32>
    %9 = vector.extract_strided_slice %1 {offsets = [2, 1, 0], sizes = [8, 16, 128], strides = [1, 1, 1]} : vector<10x18x128xf32> to vector<8x16x128xf32>
    %10 = vector.extract_strided_slice %1 {offsets = [2, 2, 0], sizes = [8, 16, 128], strides = [1, 1, 1]} : vector<10x18x128xf32> to vector<8x16x128xf32>
    %11 = tpu.concatenate %2, %3, %4, %5, %6, %7, %8, %9, %10 in 2 : vector<8x16x128xf32>, vector<8x16x128xf32>, vector<8x16x128xf32>, vector<8x16x128xf32>, vector<8x16x128xf32>, vector<8x16x128xf32>, vector<8x16x128xf32>, vector<8x16x128xf32>, vector<8x16x128xf32> -> vector<8x16x1152xf32>
    %12 = vector.shape_cast %11 : vector<8x16x1152xf32> to vector<128x1152xf32>
    %c0_4 = arith.constant 0 : index
    %c0_5 = arith.constant 0 : index
    %13 = vector.load %arg3[%c0_4, %c0_5] : memref<1152x128xf32, #tpu.memory_space<vmem>>, vector<1152x128xf32>
    %cst = arith.constant dense<0.000000e+00> : vector<128x128xf32>
    %14 = tpu.matmul %12, %13, %cst {dimension_numbers = #tpu.dot_dimension_numbers<[1], [0], [0], [1], [0, 0, 1, 1], [], []>} : vector<128x1152xf32>, vector<1152x128xf32>, vector<128x128xf32> -> vector<128x128xf32>
    %c0_6 = arith.constant 0 : index
    %c0_7 = arith.constant 0 : index
    %15 = vector.load %arg4[%c0_6, %c0_7] : memref<1x128xf32, #tpu.memory_space<vmem>>, vector<1x128xf32>
    %16 = vector.broadcast %15 : vector<1x128xf32> to vector<128x128xf32>
    %17 = arith.addf %14, %16 : vector<128x128xf32>
    %cst_8 = arith.constant 0.000000e+00 : f32
    %18 = vector.broadcast %cst_8 : f32 to vector<128x128xf32>
    %19 = arith.maximumf %17, %18 : vector<128x128xf32>
    %20 = vector.shape_cast %19 : vector<128x128xf32> to vector<8x16x128xf32>
    %c0_9 = arith.constant 0 : index
    %c0_10 = arith.constant 0 : index
    %c0_11 = arith.constant 0 : index
    %c0_12 = arith.constant 0 : index
    %21 = vector.load %arg5[%c0_9, %c0_10, %c0_11, %c0_12] : memref<1x8x16x128xf32, #tpu.memory_space<vmem>>, vector<1x8x16x128xf32>
    %22 = vector.shape_cast %21 : vector<1x8x16x128xf32> to vector<8x16x128xf32>
    %23 = vector.shape_cast %20 : vector<8x16x128xf32> to vector<1x8x16x128xf32>
    tpu.vector_store %arg5[%c0_9, %c0_10, %c0_11, %c0_12], %23 {strides = array<i32>} : memref<1x8x16x128xf32, #tpu.memory_space<vmem>>, vector<1x8x16x128xf32>,
    return
  }
  func.func @transform_0(%arg0: i32, %arg1: i32) -> (i32, i32, i32, i32, i32) {
    %c0_i32 = arith.constant 0 : i32
    %c0_i32_0 = arith.constant 0 : i32
    %c0_i32_1 = arith.constant 0 : i32
    %c0_i32_2 = arith.constant 0 : i32
    return %arg0, %arg1, %c0_i32, %c0_i32_0, %c0_i32_1 : i32, i32, i32, i32, i32
  }
  func.func @transform_1(%arg0: i32, %arg1: i32) -> (i32, i32) {
    %c0_i32 = arith.constant 0 : i32
    %c0_i32_0 = arith.constant 0 : i32
    %c0_i32_1 = arith.constant 0 : i32
    return %c0_i32, %c0_i32_0 : i32, i32
  }
  func.func @transform_2(%arg0: i32, %arg1: i32) -> (i32, i32) {
    %c0_i32 = arith.constant 0 : i32
    %c0_i32_0 = arith.constant 0 : i32
    %c0_i32_1 = arith.constant 0 : i32
    return %c0_i32, %c0_i32_0 : i32, i32
  }
  func.func @transform_3(%arg0: i32, %arg1: i32) -> (i32, i32, i32, i32) {
    %c0_i32 = arith.constant 0 : i32
    %c0_i32_0 = arith.constant 0 : i32
    %c0_i32_1 = arith.constant 0 : i32
    return %arg0, %arg1, %c0_i32, %c0_i32_0 : i32, i32, i32, i32
  }
}

</mosaic_0001>

<bundles_post_ra>
// kernel: tpu_custom_call.1
= control target key start
LH: loop header
LB: loop body
LE: loop exit
PB: predicated region body
PF: predicated region fallthrough
CT: control target
= control target key end

     0   :  { %8 = vsyncpa [#allocation3], 0  ;;  %s3349_s0 = inlined_call_operand.vmem [shape: f32[2,2,10,18,128], index: 0, kind: input, shape index: {}]   ;;  %s3350_s1 = inlined_call_operand.vmem [shape: f32[1152,128], index: 1, kind: input, shape index: {}]   ;;  %s3351_s2 = inlined_call_operand.vmem [shape: f32[1,128], index: 2, kind: input, shape index: {}]   ;;  %s3352_s3 = inlined_call_operand.hbm [shape: f32[2,16,16,128], index: 3, kind: output, shape index: {}]  }
   0x1   :  { %10 = vsyncpa [#allocation3 + $0x1], 0  ;;  %s2204_s12 = smov 0   ;;  %s2206_s13 = smov 0  }
   0x2   :  { %s2208_s14 = smov 0   ;;  %s2210_s15 = smov 0  }
   0x3   :  { %s2212_s16 = smov 0   ;;  %s2214_s17 = smov 0  }
   0x4   :  { %s2216_s18 = smov 0   ;;  %s2218_s19 = smov 0  }
   0x5 LB: > { %s1410_s20 = sadd.s32 4294967295, %s2179_s19   ;;  %s1411_s21 = sadd.s32 4294967294, %s2179_s19   ;;  %s2179_s19 = sphi %s2218_s19, %s16_s19   ;;  %s2175_s18 = sphi %s2216_s18, %s3361_s18   ;;  %s2171_s17 = sphi %s2214_s17, %s3360_s17   ;;  %s2167_s16 = sphi %s2212_s16, %s3359_s16   ;;  %s2163_s15 = sphi %s2210_s15, %s3358_s15   ;;  %s2159_s14 = sphi %s2208_s14, %s3357_s14   ;;  %s2155_s13 = sphi %s2206_s13, %s3356_s13   ;;  %s2151_s12 = sphi %s2204_s12, %s3355_s12  }
   0x6   : > { %s25_s22 = sadd.s32 1, %s2171_s17  ;;  %s28_s23 = sadd.s32 1, %s2175_s18 }
   0x7   : > { %p26_p0 = scmp.ge.s32.totalorder %s25_s22, 2  ;;  %p117_p1 = scmp.ne.s32.totalorder %s2159_s14, %s2155_s13 }
   0x8   : > { %p118_p2 = scmp.eq.s32.totalorder %s1410_s20, 3  ;;  %p123_p5 = scmp.ne.s32.totalorder %s2155_s13, %s2151_s12 }
   0x9   : > { %s3363_s22 = smov (%p26_p0, %s25_s22), 0  ;;  %s3365_s23 = smov (!%p26_p0, %s28_s23), %s2175_s18 }
   0xa   : > { %s103_s24 = ssub.s32 %s2171_s17, %s3363_s22  ;;  %p2255_p3 = por %p118_p2, %p117_p1 }
   0xb   : > { %p30_p4 = scmp.ge.s32.totalorder %s3365_s23, 2  ;;  %p124_p6 = scmp.eq.s32.totalorder %s1411_s21, 3 }
   0xc   : > { %p1414_p7 = scmp.ge.s32.totalorder %s2179_s19, 1  ;;  %p160_p9 = scmp.lt.s32.totalorder %s2179_s19, 5 }
   0xd   : > { %s3367_s23 = smov (%p30_p4, %s3365_s23), 0  ;;  %p2264_p8 = por %p124_p6, %p123_p5 }
   0xe   : > { %s102_s27 = ssub.s32 %s2175_s18, %s3367_s23  ;;  %s107_s28 = sadd.s32 1, %s2159_s14 }
   0xf   : > { %s104_s29 = sor.u32 %s103_s24, %s102_s27  ;;  %p161_p10 = pnand %p1414_p7, %p160_p9 }
  0x10   : > { %p105_p11 = scmp.eq.s32.totalorder %s104_s29, 0  ;;  %v416_v0 = vld [vmem:[%s3350_s1 + $0x80] sm:$0xff] (!%p161_p10)  ;;  %v417_v1 = vld [vmem:[%s3350_s1 + $0x88] sm:$0xff] (!%p161_p10)  ;;  %p188_p12 = scmp.lt.s32.totalorder (!%p161_p10), %s2167_s16, 1  ;;  %v418_v11 = vld [vmem:[%s3350_s1 + $0x90] sm:$0xff] (!%p161_p10)  ;;  %vm252_vm0 = vcmask (!%p161_p10), 1046528  }
  0x11   : > { %164 = sbr.rel (%p161_p10) target bundleno = 426 (0x1aa), region = 32  ;;  %v448_v2 = vld [vmem:[%s3350_s1 + $0x180] sm:$0xff] (!%p161_p10)  ;;  %p190_p13 = scmp.lt.s32.totalorder (!%p161_p10), %s2163_s15, 1  ;;  %v1834_v3 = vpack.c.bf16 (!%p161_p10), %v417_v1, %v416_v0  ;;  %v449_v4 = vld [vmem:[%s3350_s1 + $0x188] sm:$0xff] (!%p161_p10)  ;;  %v419_v13 = vld [vmem:[%s3350_s1 + $0x98] sm:$0xff] (!%p161_p10)  ;;  %vm309_vm1 = vcmask (!%p161_p10), 1045504  }
  0x12   : > { %s2273_s30 = scalar_select %p105_p11, %s2159_s14, %s107_s28  }
  0x13   : > { %v400_v5 = vld [vmem:[%s3350_s1] sm:$0xff] (!%p161_p10)  ;;  %v401_v6 = vld [vmem:[%s3350_s1 + $0x8] sm:$0xff] (!%p161_p10)  ;;  %v1866_v7 = vpack.c.bf16 (!%p161_p10), %v449_v4, %v448_v2  ;;  %1835 = vmatprep.subr.bf16.mxu0 (!%p161_p10), %v1834_v3  ;;  %v450_v14 = vld [vmem:[%s3350_s1 + $0x190] sm:$0xff] (!%p161_p10)  ;;  %v1838_v16 = vpack.c.bf16 (!%p161_p10), %v419_v13, %v418_v11  ;;  %s185_s20 = sand.u32 (!%p161_p10), 1, %s2155_s13   ;;  %s2181_s11 = smov (!%p161_p10), [#allocation2]  }
  0x14   : > { %v1836_v8 = vpack.c.bf16 (!%p161_p10), %v401_v6, %v400_v5  ;;  %v432_v9 = vld [vmem:[%s3350_s1 + $0x100] sm:$0xff] (!%p161_p10)  ;;  %v433_v10 = vld [vmem:[%s3350_s1 + $0x108] sm:$0xff] (!%p161_p10)  ;;  %v451_v15 = vld [vmem:[%s3350_s1 + $0x198] sm:$0xff] (!%p161_p10)  ;;  %s1415_s21 = sshll.u32 (!%p161_p10), %s185_s20, 7 }
  0x15   : > { %v1868_v12 = vpack.c.bf16 (!%p161_p10), %v433_v10, %v432_v9  ;;  %1867 = vmatprep.subr.bf16.mxu1 (!%p161_p10), %v1866_v7  ;;  %v1870_v17 = vpack.c.bf16 (!%p161_p10), %v451_v15, %v450_v14  ;;  %v402_v18 = vld [vmem:[%s3350_s1 + $0x10] sm:$0xff] (!%p161_p10)  ;;  %v403_v19 = vld [vmem:[%s3350_s1 + $0x18] sm:$0xff] (!%p161_p10)  ;;  %v420_v23 = vld [vmem:[%s3350_s1 + $0xa0] sm:$0xff] (!%p161_p10)  ;;  %s3258_s28 = scalar_lea.vmem (!%p161_p10), [#allocation2], %s1415_s21 }
  0x16   : > { %1837 = vmatpush3.bf16.msra.mxu0 (!%p161_p10), %v1836_v8  ;;  %v434_v20 = vld [vmem:[%s3350_s1 + $0x110] sm:$0xff] (!%p161_p10)  ;;  %v1840_v21 = vpack.c.bf16 (!%p161_p10), %v403_v19, %v402_v18  ;;  %v435_v22 = vld [vmem:[%s3350_s1 + $0x118] sm:$0xff] (!%p161_p10)  ;;  %v421_v24 = vld [vmem:[%s3350_s1 + $0xa8] sm:$0xff] (!%p161_p10)  ;;  %s1325_s4 = sshll.u32 (!%p161_p10), %s3258_s28, 4  ;;  %s3289_s4 = int_to_ptr.vmem [resolvable:$true] %s1325_s4 }
  0x17   : > { %1869 = vmatpush3.bf16.msra.mxu1 (!%p161_p10), %v1868_v12  ;;  %1839 = vmatprep.subr.bf16.mxu0 (!%p161_p10), %v1838_v16  ;;  %v1872_v25 = vpack.c.bf16 (!%p161_p10), %v435_v22, %v434_v20  ;;  %v1842_v26 = vpack.c.bf16 (!%p161_p10), %v421_v24, %v420_v23  ;;  %v452_v27 = vld [vmem:[%s3350_s1 + $0x1a0] sm:$0xff] (!%p161_p10)  ;;  %v453_v28 = vld [vmem:[%s3350_s1 + $0x1a8] sm:$0xff] (!%p161_p10)  ;;  %v422_v35 = vld [vmem:[%s3350_s1 + $0xb0] sm:$0xff] (!%p161_p10)  ;;  %s2085_s10 = scalar_lea.vmem (!%p161_p10), %s3289_s4, 2048 }
  0x18   : > { %s2316_s24 = scalar_select %p188_p12, %s2167_s16, 1  ;;  %1871 = vmatprep.subr.bf16.mxu1 %v1870_v17  ;;  %v404_v29 = vld [vmem:[%s3350_s1 + $0x20] sm:$0xff]  ;;  %v1874_v30 = vpack.c.bf16 %v453_v28, %v452_v27  ;;  %v405_v31 = vld [vmem:[%s3350_s1 + $0x28] sm:$0xff]  ;;  %v423_v36 = vld [vmem:[%s3350_s1 + $0xb8] sm:$0xff] }
  0x19   : > { %s2330_s7 = scalar_select %p190_p13, %s2163_s15, 1  ;;  %v436_v32 = vld [vmem:[%s3350_s1 + $0x120] sm:$0xff]  ;;  %v437_v33 = vld [vmem:[%s3350_s1 + $0x128] sm:$0xff]  ;;  %v1844_v34 = vpack.c.bf16 %v405_v31, %v404_v29  ;;  %v454_v37 = vld [vmem:[%s3350_s1 + $0x1b0] sm:$0xff]  ;;  %v1846_v39 = vpack.c.bf16 %v423_v36, %v422_v35 }
  0x1a   : > { %s2011_s27 = smul.u32 60, %s2316_s24  ;;  %1841 = vmatpush3.bf16.msra.mxu0 %v1840_v21  ;;  %v1876_v38 = vpack.c.bf16 %v437_v33, %v436_v32  ;;  %v455_v40 = vld [vmem:[%s3350_s1 + $0x1b8] sm:$0xff]  ;;  %v406_v41 = vld [vmem:[%s3350_s1 + $0x30] sm:$0xff]  ;;  %v424_v46 = vld [vmem:[%s3350_s1 + $0xc0] sm:$0xff]  ;;  %p2086_p0 = scmp.ne.s32.totalorder %s3289_s4, %s2085_s10 }
  0x1b   : > { %s2010_s9 = smul.u32 30, %s2330_s7  ;;  %1873 = vmatpush3.bf16.msra.mxu1 %v1872_v25  ;;  %1843 = vmatprep.subr.bf16.mxu0 %v1842_v26  ;;  %v407_v42 = vld [vmem:[%s3350_s1 + $0x38] sm:$0xff]  ;;  %v1878_v43 = vpack.c.bf16 %v455_v40, %v454_v37  ;;  %v438_v44 = vld [vmem:[%s3350_s1 + $0x130] sm:$0xff]  ;;  %v425_v47 = vld [vmem:[%s3350_s1 + $0xc8] sm:$0xff]  ;;  %s1421_s7 = sshll.u32 %s2167_s16, 5 }
  0x1c   : > { %1875 = vmatprep.subr.bf16.mxu1 %v1874_v30  ;;  %v439_v45 = vld [vmem:[%s3350_s1 + $0x138] sm:$0xff]  ;;  %v456_v48 = vld [vmem:[%s3350_s1 + $0x1c0] sm:$0xff]  ;;  %v457_v49 = vld [vmem:[%s3350_s1 + $0x1c8] sm:$0xff]  ;;  %v1848_v50 = vpack.c.bf16 %v407_v42, %v406_v41  ;;  %v1850_v52 = vpack.c.bf16 %v425_v47, %v424_v46  ;;  %p2087_p1 = pnand %p2086_p0, %p2255_p3 }
  0x1d   : > { %s2397_s29 = sadd.s32 %s2011_s27, %s2010_s9  ;;  %v1880_v51 = vpack.c.bf16 %v439_v45, %v438_v44  ;;  %v408_v53 = vld [vmem:[%s3350_s1 + $0x40] sm:$0xff]  ;;  %v409_v54 = vld [vmem:[%s3350_s1 + $0x48] sm:$0xff]  ;;  %v1882_v56 = vpack.c.bf16 %v457_v49, %v456_v48  ;;  %v426_v58 = vld [vmem:[%s3350_s1 + $0xd0] sm:$0xff]  ;;  %s3297_s9 = scalar_lea.sflag [#allocation3], %s185_s20 }
  0x1e   : > { %1845 = vmatpush3.bf16.msra.mxu0 %v1844_v34  ;;  %v440_v55 = vld [vmem:[%s3350_s1 + $0x140] sm:$0xff]  ;;  %v441_v57 = vld [vmem:[%s3350_s1 + $0x148] sm:$0xff]  ;;  %v427_v59 = vld [vmem:[%s3350_s1 + $0xd8] sm:$0xff]  ;;  %s1416_s6 = sshll.u32 %s2397_s29, 3  ;;  %v1852_v62 = vpack.c.bf16 %v409_v54, %v408_v53  ;;  %p2088_p2 = pneg %p2087_p1 }
  0x1f   : > { %1877 = vmatpush3.bf16.msra.mxu1 %v1876_v38  ;;  %1847 = vmatprep.subr.bf16.mxu0 %v1846_v39  ;;  %v458_v60 = vld [vmem:[%s3350_s1 + $0x1d0] sm:$0xff]  ;;  %v459_v61 = vld [vmem:[%s3350_s1 + $0x1d8] sm:$0xff]  ;;  %v1884_v63 = vpack.c.bf16 %v441_v57, %v440_v55  ;;  %v1854_v0 = vpack.c.bf16 %v427_v59, %v426_v58  ;;  %v428_v6 = vld [vmem:[%s3350_s1 + $0xe0] sm:$0xff]  ;;  %s2445_s24 = scalar_lea.vmem %s3349_s0, %s1416_s6  ;;  %s1425_s6 = sshll.u32 %s2163_s15, 4 }
  0x20   : > { %1879 = vmatprep.subr.bf16.mxu1 %v1878_v43  ;;  %v410_v1 = vld [vmem:[%s3350_s1 + $0x50] sm:$0xff]  ;;  %v411_v2 = vld [vmem:[%s3350_s1 + $0x58] sm:$0xff]  ;;  %v1886_v4 = vpack.c.bf16 %v459_v61, %v458_v60  ;;  %v429_v7 = vld [vmem:[%s3350_s1 + $0xe8] sm:$0xff]  ;;  %s1322_s15 = sadd.s32 %s1425_s6, %s1421_s7 }
  0x21   : > { %v442_v3 = vld [vmem:[%s3350_s1 + $0x150] sm:$0xff]  ;;  %v443_v5 = vld [vmem:[%s3350_s1 + $0x158] sm:$0xff]  ;;  %v460_v8 = vld [vmem:[%s3350_s1 + $0x1e0] sm:$0xff]  ;;  %v1856_v10 = vpack.c.bf16 %v411_v2, %v410_v1  ;;  %v1858_v15 = vpack.c.bf16 %v429_v7, %v428_v6  ;;  %s1422_s16 = sshll.u32 %s1322_s15, 7 }
  0x22   : > { %1849 = vmatpush3.bf16.msra.mxu0 %v1848_v50  ;;  %v461_v9 = vld [vmem:[%s3350_s1 + $0x1e8] sm:$0xff]  ;;  %v412_v11 = vld [vmem:[%s3350_s1 + $0x60] sm:$0xff]  ;;  %v1888_v14 = vpack.c.bf16 %v443_v5, %v442_v3  ;;  %v430_v20 = vld [vmem:[%s3350_s1 + $0xf0] sm:$0xff]  ;;  %s3287_s27 = scalar_lea.hbm %s3352_s3, %s1422_s16 }
  0x23   : > { %1881 = vmatpush3.bf16.msra.mxu1 %v1880_v51  ;;  %1851 = vmatprep.subr.bf16.mxu0 %v1850_v52  ;;  %v413_v12 = vld [vmem:[%s3350_s1 + $0x68] sm:$0xff]  ;;  %v444_v13 = vld [vmem:[%s3350_s1 + $0x160] sm:$0xff]  ;;  %v1890_v19 = vpack.c.bf16 %v461_v9, %v460_v8  ;;  %v431_v21 = vld [vmem:[%s3350_s1 + $0xf8] sm:$0xff] }
  0x24   : > { %1883 = vmatprep.subr.bf16.mxu1 %v1882_v56  ;;  %v445_v16 = vld [vmem:[%s3350_s1 + $0x168] sm:$0xff]  ;;  %v2466_v17 = vld [vmem:[%s2445_s24] sm:$0xff]  ;;  %v2480_v24 = vld [vmem:[%s2445_s24 + $0x18] sm:$0xff]  ;;  %v1860_v27 = vpack.c.bf16 %v413_v12, %v412_v11  ;;  %v1862_v30 = vpack.c.bf16 %v431_v21, %v430_v20 }
  0x25   : > { %v2469_v18 = vld [vmem:[%s2445_s24 + $0x8] sm:$0xff]  ;;  %v253_v22 = vrot.slane %v2466_v17, 1  ;;  %v462_v25 = vld [vmem:[%s3350_s1 + $0x1f0] sm:$0xff]  ;;  %v463_v26 = vld [vmem:[%s3350_s1 + $0x1f8] sm:$0xff]  ;;  %760 = vmatprep.mubr.f32.mxu1 %v2480_v24  ;;  %v1892_v29 = vpack.c.bf16 %v445_v16, %v444_v13  ;;  %v310_v43 = vrot.slane %v2466_v17, 2  ;;  %v258_v56 = vrot.slane %v2480_v24, 1 }
  0x26   : > { %1853 = vmatpush3.bf16.msra.mxu0 %v1852_v62  ;;  %v254_v23 = vrot.slane %v2469_v18, 1  ;;  %v414_v31 = vld [vmem:[%s3350_s1 + $0x70] sm:$0xff]  ;;  %v415_v32 = vld [vmem:[%s3350_s1 + $0x78] sm:$0xff]  ;;  %v1894_v34 = vpack.c.bf16 %v463_v26, %v462_v25  ;;  %v480_v36 = vld [vmem:[%s3350_s1 + $0x280] sm:$0xff]  ;;  %v311_v44 = vrot.slane %v2469_v18, 2  ;;  %v315_v9 = vrot.slane %v2480_v24, 2 }
  0x27   : > { %1885 = vmatpush3.bf16.msra.mxu1 %v1884_v63  ;;  %1855 = vmatprep.subr.bf16.mxu0 %v1854_v0  ;;  %v446_v33 = vld [vmem:[%s3350_s1 + $0x170] sm:$0xff]  ;;  %v447_v35 = vld [vmem:[%s3350_s1 + $0x178] sm:$0xff]  ;;  %v481_v37 = vld [vmem:[%s3350_s1 + $0x288] sm:$0xff]  ;;  %v1864_v41 = vpack.c.bf16 %v415_v32, %v414_v31 }
  0x28   : > { %1887 = vmatprep.subr.bf16.mxu1 %v1886_v4  ;;  %v255_v28 = vsel %vm252_vm0, %v253_v22, %v254_v23  ;;  %v512_v38 = vld [vmem:[%s3350_s1 + $0x380] sm:$0xff]  ;;  %v513_v39 = vld [vmem:[%s3350_s1 + $0x388] sm:$0xff]  ;;  %v200_v40 = vld [vmem:[%s2445_s24 + $0x10] sm:$0x3]  ;;  %v1896_v42 = vpack.c.bf16 %v447_v35, %v446_v33  ;;  %v1898_v45 = vpack.c.bf16 %v481_v37, %v480_v36  ;;  %v312_v59 = vsel %vm309_vm1, %v310_v43, %v311_v44 }
  0x29   : > { %615 = vmatprep.mubr.f32.mxu0 %v255_v28  ;;  %v464_v46 = vld [vmem:[%s3350_s1 + $0x200] sm:$0xff]  ;;  %v465_v47 = vld [vmem:[%s3350_s1 + $0x208] sm:$0xff]  ;;  %v1930_v48 = vpack.c.bf16 %v513_v39, %v512_v38  ;;  %v256_v51 = vrot.slane %v200_v40, 1  ;;  %v482_v53 = vld [vmem:[%s3350_s1 + $0x290] sm:$0xff]  ;;  %v313_v61 = vrot.slane %v200_v40, 2 }
  0x2a   : > { %1857 = vmatpush3.bf16.msra.mxu0 %v1856_v10  ;;  %v496_v49 = vld [vmem:[%s3350_s1 + $0x300] sm:$0xff]  ;;  %v497_v50 = vld [vmem:[%s3350_s1 + $0x308] sm:$0xff]  ;;  %v483_v54 = vld [vmem:[%s3350_s1 + $0x298] sm:$0xff]  ;;  %v1900_v55 = vpack.c.bf16 %v465_v47, %v464_v46 }
  0x2b   : > { %1889 = vmatpush3.bf16.msra.mxu1 %v1888_v14  ;;  %1859 = vmatprep.subr.bf16.mxu0 %v1858_v15  ;;  %v2530_v52 = vld [vmem:[%s2445_s24 + $0x20] sm:$0xff]  ;;  %v514_v57 = vld [vmem:[%s3350_s1 + $0x390] sm:$0xff]  ;;  %v515_v58 = vld [vmem:[%s3350_s1 + $0x398] sm:$0xff]  ;;  %v1932_v60 = vpack.c.bf16 %v497_v50, %v496_v49  ;;  %v257_v0 = vsel %vm252_vm0, %v254_v23, %v256_v51  ;;  %v1902_v1 = vpack.c.bf16 %v483_v54, %v482_v53 }
  0x2c   : > { %1891 = vmatprep.subr.bf16.mxu1 %v1890_v19  ;;  %v259_v62 = vrot.slane %v2530_v52, 1  ;;  %v466_v63 = vld [vmem:[%s3350_s1 + $0x210] sm:$0xff]  ;;  %v467_v2 = vld [vmem:[%s3350_s1 + $0x218] sm:$0xff]  ;;  %v2558_v4 = vld [vmem:[%s2445_s24 + $0x28] sm:$0x3]  ;;  %v1934_v5 = vpack.c.bf16 %v515_v58, %v514_v57  ;;  %v316_v10 = vrot.slane %v2530_v52, 2  ;;  %v314_v13 = vsel %vm309_vm1, %v311_v44, %v313_v61 }
  0x2d   : > { %v498_v3 = vld [vmem:[%s3350_s1 + $0x310] sm:$0xff]  ;;  %v499_v6 = vld [vmem:[%s3350_s1 + $0x318] sm:$0xff]  ;;  %v484_v7 = vld [vmem:[%s3350_s1 + $0x2a0] sm:$0xff]  ;;  %v1904_v16 = vpack.c.bf16 %v467_v2, %v466_v63 }
  0x2e   : > { %1861 = vmatpush3.bf16.msra.mxu0 %v1860_v27  ;;  %v485_v8 = vld [vmem:[%s3350_s1 + $0x2a8] sm:$0xff]  ;;  %v516_v11 = vld [vmem:[%s3350_s1 + $0x3a0] sm:$0xff]  ;;  %v2580_v14 = vsel %vm252_vm0, %v258_v56, %v259_v62  ;;  %v2583_v15 = vld [vmem:[%s2445_s24 + $0x30] sm:$0xff]  ;;  %v1936_v20 = vpack.c.bf16 %v499_v6, %v498_v3 }
  0x2f   : > { %1893 = vmatpush3.bf16.msra.mxu1 %v1892_v29  ;;  %1863 = vmatprep.subr.bf16.mxu0 %v1862_v30  ;;  %v517_v12 = vld [vmem:[%s3350_s1 + $0x3a8] sm:$0xff]  ;;  %v2587_v19 = vld [vmem:[%s2445_s24 + $0x38] sm:$0xff]  ;;  %v1906_v21 = vpack.c.bf16 %v485_v8, %v484_v7  ;;  %v468_v22 = vld [vmem:[%s3350_s1 + $0x220] sm:$0xff]  ;;  %v263_v30 = vrot.slane %v2583_v15, 1 }
  0x30   : > { %1895 = vmatprep.subr.bf16.mxu1 %v1894_v34  ;;  %v469_v23 = vld [vmem:[%s3350_s1 + $0x228] sm:$0xff]  ;;  %v500_v25 = vld [vmem:[%s3350_s1 + $0x320] sm:$0xff]  ;;  %v1938_v26 = vpack.c.bf16 %v517_v12, %v516_v11  ;;  %v486_v28 = vld [vmem:[%s3350_s1 + $0x2b0] sm:$0xff]  ;;  %v318_v34 = vrot.slane %v2558_v4, 2  ;;  %v264_v35 = vrot.slane %v2587_v19, 1  ;;  %v321_v47 = vrot.slane %v2587_v19, 2 }
  0x31   : > { %v501_v27 = vld [vmem:[%s3350_s1 + $0x328] sm:$0xff]  ;;  %v487_v29 = vld [vmem:[%s3350_s1 + $0x2b8] sm:$0xff]  ;;  %v518_v31 = vld [vmem:[%s3350_s1 + $0x3b0] sm:$0xff]  ;;  %v1908_v36 = vpack.c.bf16 %v469_v23, %v468_v22 }
  0x32   : > { %1865 = vmatpush3.bf16.msra.mxu0 %v1864_v41  ;;  %v519_v32 = vld [vmem:[%s3350_s1 + $0x3b8] sm:$0xff]  ;;  %v2627_v37 = vld [vmem:[%s2445_s24 + $0x40] sm:$0x3]  ;;  %v1940_v38 = vpack.c.bf16 %v501_v27, %v500_v25  ;;  %v1910_v39 = vpack.c.bf16 %v487_v29, %v486_v28  ;;  %v470_v40 = vld [vmem:[%s3350_s1 + $0x230] sm:$0xff]  ;;  %v2660_v50 = vsel %vm309_vm1, %v316_v10, %v318_v34  ;;  %v2663_v51 = vsel %vm252_vm0, %v263_v30, %v264_v35 }
  0x33   : > { %1897 = vmatpush3.bf16.msra.mxu1 %v1896_v42  ;;  %1899 = vmatprep.subr.bf16.mxu0 %v1898_v45  ;;  %v471_v41 = vld [vmem:[%s3350_s1 + $0x238] sm:$0xff]  ;;  %v502_v42 = vld [vmem:[%s3350_s1 + $0x330] sm:$0xff]  ;;  %v1942_v43 = vpack.c.bf16 %v519_v32, %v518_v31  ;;  %v488_v45 = vld [vmem:[%s3350_s1 + $0x2c0] sm:$0xff]  ;;  %v266_v54 = vrot.slane %v2627_v37, 1 }
  0x34   : > { %1931 = vmatprep.subr.bf16.mxu1 %v1930_v48  ;;  %v503_v44 = vld [vmem:[%s3350_s1 + $0x338] sm:$0xff]  ;;  %v489_v46 = vld [vmem:[%s3350_s1 + $0x2c8] sm:$0xff]  ;;  %v520_v48 = vld [vmem:[%s3350_s1 + $0x3c0] sm:$0xff]  ;;  %v1912_v56 = vpack.c.bf16 %v471_v41, %v470_v40 }
  0x35   : > { %616 = vmatmul.mubr.f32.vlgmr.msra.gmra.mrb[0].mxu0 %v2466_v17  ;;  %v261_v17 = vrot.slane %v2558_v4, 1  ;;  %v521_v49 = vld [vmem:[%s3350_s1 + $0x3c8] sm:$0xff]  ;;  %v1944_v57 = vpack.c.bf16 %v503_v44, %v502_v42  ;;  %v2673_v58 = vld [vmem:[%s2445_s24 + $0x58] sm:$0x3]  ;;  %v2686_v63 = vld [vmem:[%s2445_s24 + $0x60] sm:$0xff] }
  0x36   : > { %761 = vmatmul.mubr.f32.vlgmr.msra.gmra.mrb[0].mxu1 %v312_v59  ;;  %1901 = vmatpush3.bf16.msra.mxu0 %v1900_v55  ;;  %v2666_v53 = vld [vmem:[%s2445_s24 + $0x48] sm:$0xff]  ;;  %v2670_v55 = vld [vmem:[%s2445_s24 + $0x50] sm:$0xff]  ;;  %v1914_v59 = vpack.c.bf16 %v489_v46, %v488_v45  ;;  %v491_v3 = vld [vmem:[%s3350_s1 + $0x2d8] sm:$0xff]  ;;  %v273_v22 = vrot.slane %v2686_v63, 1  ;;  %v271_v29 = vrot.slane %v2673_v58, 1  ;;  %v328_v30 = vrot.slane %v2673_v58, 2 }
  0x37   : > { %1933 = vmatpush3.bf16.msra.mxu1 %v1932_v60  ;;  %620 = vmatprep.mubr.f32.mxu0 %v257_v0  ;;  %v2622_v33 = vsel %vm252_vm0, %v259_v62, %v261_v17  ;;  %v472_v60 = vld [vmem:[%s3350_s1 + $0x240] sm:$0xff]  ;;  %v473_v61 = vld [vmem:[%s3350_s1 + $0x248] sm:$0xff]  ;;  %v1946_v0 = vpack.c.bf16 %v521_v49, %v520_v48  ;;  %v490_v2 = vld [vmem:[%s3350_s1 + $0x2d0] sm:$0xff]  ;;  %v268_v4 = vrot.slane %v2666_v53, 1  ;;  %v269_v11 = vrot.slane %v2670_v55, 1 }
  0x38   : > { %765 = vmatprep.mubr.f32.mxu1 %v2530_v52  ;;  %1903 = vmatprep.subr.bf16.mxu0 %v1902_v1  ;;  %v504_v62 = vld [vmem:[%s3350_s1 + $0x340] sm:$0xff]  ;;  %v505_v1 = vld [vmem:[%s3350_s1 + $0x348] sm:$0xff]  ;;  %v522_v6 = vld [vmem:[%s3350_s1 + $0x3d0] sm:$0xff]  ;;  %v1916_v12 = vpack.c.bf16 %v473_v61, %v472_v60  ;;  %v1918_v25 = vpack.c.bf16 %v491_v3, %v490_v2  ;;  %v330_v3 = vrot.slane %v2686_v63, 2 }
  0x39   : > { %621 = vmatmul.mubr.f32.gmra.mrb[2].mxu0 %v2469_v18  ;;  %1935 = vmatprep.subr.bf16.mxu1 %v1934_v5  ;;  %v2611_v18 = vsel %vm309_vm1, %v315_v9, %v316_v10  ;;  %v325_v5 = vrot.slane %v2666_v53, 2  ;;  %v523_v7 = vld [vmem:[%s3350_s1 + $0x3d8] sm:$0xff]  ;;  %v2715_v8 = vld [vmem:[%s3350_s1 + $0x250] sm:$0xff]  ;;  %v2719_v9 = vsel %vm252_vm0, %v264_v35, %v266_v54  ;;  %v323_v10 = vrot.slane %v2627_v37, 2  ;;  %v2749_v27 = vld [vmem:[%s3350_s1 + $0x2e0] sm:$0xff] }
  0x3a   : > { %766 = vmatmul.mubr.f32.gmra.mrb[2].mxu1 %v314_v13  ;;  %625 = vmatprep.mubr.f32.mxu0 %v2580_v14  ;;  %v2726_v13 = vld [vmem:[%s3350_s1 + $0x258] sm:$0xff]  ;;  %v2734_v17 = vld [vmem:[%s2445_s24 + $0xb0] sm:$0xff]  ;;  %v1948_v23 = vpack.c.bf16 %v505_v1, %v504_v62  ;;  %v493_v28 = vld [vmem:[%s3350_s1 + $0x2e8] sm:$0xff]  ;;  %v1950_v31 = vpack.c.bf16 %v523_v7, %v522_v6  ;;  %v2830_v61 = vsel %vm252_vm0, %v269_v11, %v271_v29 }
  0x3b   : > { %770 = vmatprep.mubr.f32.mxu1 %v2583_v15  ;;  %1905 = vmatpush3.bf16.msra.mxu0 %v1904_v16  ;;  %v2731_v16 = vld [vmem:[%s3350_s1 + $0x350] sm:$0xff]  ;;  %v2760_v32 = vld [vmem:[%s3350_s1 + $0x3e0] sm:$0xff]  ;;  %v2766_v35 = vld [vmem:[%s2445_s24 + $0xb8] sm:$0x3]  ;;  %v289_v37 = vrot.slane %v2734_v17, 1  ;;  %v2784_v42 = vsel %vm309_vm1, %v321_v47, %v323_v10  ;;  %v1920_v44 = vpack.c.bf16 %v2726_v13, %v2715_v8  ;;  %v1922_v49 = vpack.c.bf16 %v493_v28, %v2749_v27 }
  0x3c   : > { %1937 = vmatpush3.bf16.msra.mxu1 %v1936_v20  ;;  %1907 = vmatprep.subr.bf16.mxu0 %v1906_v21  ;;  %v326_v20 = vrot.slane %v2670_v55, 2  ;;  %v2738_v21 = vld [vmem:[%s2445_s24 + $0x68] sm:$0xff]  ;;  %v2763_v34 = vld [vmem:[%s2445_s24 + $0xc0] sm:$0xff]  ;;  %v526_v1 = vld [vmem:[%s3350_s1 + $0x3f0] sm:$0xff] }
  0x3d   : > { %626 = vmatmul.mubr.f32.gmra.mrb[4].mxu0 %v2480_v24  ;;  %1939 = vmatprep.subr.bf16.mxu1 %v1938_v26  ;;  %v320_v24 = vrot.slane %v2583_v15, 2  ;;  %v2744_v26 = vld [vmem:[%s3350_s1 + $0x358] sm:$0xff]  ;;  %v369_v40 = vrot.slane %v2763_v34, 1  ;;  %v376_v41 = vrot.slane %v2763_v34, 2  ;;  %v2794_v45 = vld [vmem:[%s3350_s1 + $0x260] sm:$0xff]  ;;  %v2799_v46 = vld [vmem:[%s3350_s1 + $0x268] sm:$0xff] }
  0x3e   : > { %771 = vmatmul.mubr.f32.gmra.mrb[4].mxu1 %v2611_v18  ;;  %630 = vmatprep.mubr.f32.mxu0 %v2622_v33  ;;  %v1952_v48 = vpack.c.bf16 %v2744_v26, %v2731_v16  ;;  %v509_v54 = vld [vmem:[%s3350_s1 + $0x368] sm:$0xff]  ;;  %v2827_v60 = vsel %vm309_vm1, %v325_v5, %v326_v20  ;;  %v274_v62 = vrot.slane %v2738_v21, 1  ;;  %v2840_v2 = vsel %vm309_vm1, %v326_v20, %v328_v30  ;;  %v527_v5 = vld [vmem:[%s3350_s1 + $0x3f8] sm:$0xff]  ;;  %v478_v6 = vld [vmem:[%s3350_s1 + $0x270] sm:$0xff] }
  0x3f   : > { %775 = vmatprep.mubr.f32.mxu1 %v2587_v19  ;;  %1909 = vmatpush3.bf16.msra.mxu0 %v1908_v36  ;;  %v525_v36 = vld [vmem:[%s3350_s1 + $0x3e8] sm:$0xff]  ;;  %v479_v7 = vld [vmem:[%s3350_s1 + $0x278] sm:$0xff]  ;;  %v224_v20 = vld [vmem:[%s2445_s24 + $0xd0] sm:$0x3] }
  0x40   : > { %1941 = vmatpush3.bf16.msra.mxu1 %v1940_v38  ;;  %1911 = vmatprep.subr.bf16.mxu0 %v1910_v39  ;;  %v291_v38 = vrot.slane %v2766_v35, 1  ;;  %v2776_v39 = vld [vmem:[%s2445_s24 + $0xc8] sm:$0xff]  ;;  %v510_v26 = vld [vmem:[%s3350_s1 + $0x370] sm:$0xff]  ;;  %v511_v27 = vld [vmem:[%s3350_s1 + $0x378] sm:$0xff]  ;;  %v372_v28 = vrot.slane %v224_v20, 1 }
  0x41   : > { %631 = vmatmul.mubr.f32.gmra.mrb[6].mxu0 %v2530_v52  ;;  %1943 = vmatprep.subr.bf16.mxu1 %v1942_v43  ;;  %v2702_v52 = vsel %vm309_vm1, %v320_v24, %v321_v47  ;;  %v2787_v43 = vsel %vm252_vm0, %v268_v4, %v269_v11  ;;  %v2804_v24 = vld [vmem:[%s3350_s1 + $0x360] sm:$0xff]  ;;  %v370_v47 = vrot.slane %v2776_v39, 1  ;;  %v2844_v4 = vld [vmem:[%s2445_s24 + $0x70] sm:$0x3]  ;;  %v331_v11 = vrot.slane %v2738_v21, 2 }
  0x42   : > { %776 = vmatmul.mubr.f32.gmra.mrb[6].mxu1 %v2660_v50  ;;  %635 = vmatprep.mubr.f32.mxu0 %v2663_v51  ;;  %v2822_v58 = vsel %vm252_vm0, %v289_v37, %v291_v38  ;;  %v1956_v13 = vpack.c.bf16 %v509_v54, %v2804_v24  ;;  %v528_v38 = vld [vmem:[%s3350_s1 + $0x400] sm:$0xff]  ;;  %v1928_v54 = vpack.c.bf16 %v479_v7, %v478_v6 }
  0x43   : > { %780 = vmatprep.mubr.f32.mxu1 %v2666_v53  ;;  %1913 = vmatpush3.bf16.msra.mxu0 %v1912_v56  ;;  %v494_v56 = vld [vmem:[%s3350_s1 + $0x2f0] sm:$0xff]  ;;  %v2856_v8 = vsel %vm252_vm0, %v369_v40, %v370_v47  ;;  %v529_v40 = vld [vmem:[%s3350_s1 + $0x408] sm:$0xff] }
  0x44   : > { %1945 = vmatpush3.bf16.msra.mxu1 %v1944_v57  ;;  %1915 = vmatprep.subr.bf16.mxu0 %v1914_v59  ;;  %v495_v57 = vld [vmem:[%s3350_s1 + $0x2f8] sm:$0xff]  ;;  %v377_v59 = vrot.slane %v2776_v39, 2 }
  0x45   : > { %636 = vmatmul.mubr.f32.gmra.mrb[8].mxu0 %v2583_v15  ;;  %1947 = vmatprep.subr.bf16.mxu1 %v1946_v0  ;;  %v1954_v0 = vpack.c.bf16 %v525_v36, %v2760_v32  ;;  %v1926_v16 = vpack.c.bf16 %v495_v57, %v494_v56  ;;  %v2887_v32 = vsel %vm252_vm0, %v273_v22, %v274_v62 }
  0x46   : > { %781 = vmatmul.mubr.f32.gmra.mrb[8].mxu1 %v2702_v52  ;;  %640 = vmatprep.mubr.f32.mxu0 %v2719_v9  ;;  %v2859_v10 = vsel %vm309_vm1, %v376_v41, %v377_v59  ;;  %v1958_v36 = vpack.c.bf16 %v527_v5, %v526_v1  ;;  %v227_v41 = vld [vmem:[%s2445_s24 + $0xe8] sm:$0x3]  ;;  %v2901_v22 = vsel %vm252_vm0, %v370_v47, %v372_v28  ;;  %v2918_v47 = vld [vmem:[%s2445_s24 + $0x80] sm:$0xff] }
  0x47   : > { %785 = vmatprep.mubr.f32.mxu1 %v2670_v55  ;;  %1917 = vmatpush3.bf16.msra.mxu0 %v1916_v12  ;;  %v1924_v12 = vpack.c.bf16 %v2799_v46, %v2794_v45  ;;  %v396_v57 = vrot.slane %v227_v41, 2  ;;  %v2920_v1 = vpack.c.bf16 %v529_v40, %v528_v38 }
  0x48   : > { %1949 = vmatpush3.bf16.msra.mxu1 %v1948_v23  ;;  %1919 = vmatprep.subr.bf16.mxu0 %v1918_v25  ;;  %v2868_v23 = vld [vmem:[%s2445_s24 + $0xd8] sm:$0xff]  ;;  %v2871_v25 = vld [vmem:[%s2445_s24 + $0xe0] sm:$0xff] }
  0x49   : > { %641 = vmatmul.mubr.f32.gmra.mrb[10].mxu0 %v2587_v19  ;;  %1951 = vmatprep.subr.bf16.mxu1 %v1950_v31  ;;  %v386_v29 = vrot.slane %v2868_v23, 1  ;;  %v387_v30 = vrot.slane %v2871_v25, 1  ;;  %v379_v31 = vrot.slane %v224_v20, 2  ;;  %v394_v45 = vrot.slane %v2871_v25, 2 }
  0x4a   : > { %786 = vmatmul.mubr.f32.gmra.mrb[10].mxu1 %v2784_v42  ;;  %645 = vmatprep.mubr.f32.mxu0 %v2787_v43  ;;  %v279_v20 = vrot.slane %v2918_v47, 1 }
  0x4b   : > { %790 = vmatprep.mubr.f32.mxu1 %v2686_v63  ;;  %1921 = vmatpush3.bf16.msra.mxu0 %v1920_v44  ;;  %v393_v44 = vrot.slane %v2868_v23, 2  ;;  %v2904_v46 = vsel %vm252_vm0, %v386_v29, %v387_v30  ;;  %v2907_v24 = vsel %vm309_vm1, %v377_v59, %v379_v31  ;;  %v1960_v59 = vpack.c.bf16 %v511_v27, %v510_v26  ;;  %v215_v26 = vld [vmem:[%s2445_s24 + $0x88] sm:$0x3]  ;;  %v2963_v29 = vld [vmem:[%s2445_s24 + $0x90] sm:$0xff] }
  0x4c   : > { %1953 = vmatpush3.bf16.msra.mxu1 %v1952_v48  ;;  %1923 = vmatprep.subr.bf16.mxu0 %v1922_v49  ;;  %v389_v48 = vrot.slane %v227_v41, 1  ;;  %v276_v49 = vrot.slane %v2844_v4, 1  ;;  %v2927_v6 = vsel %vm309_vm1, %v394_v45, %v396_v57  ;;  %v336_v27 = vrot.slane %v2918_v47, 2  ;;  %v218_v41 = vld [vmem:[%s2445_s24 + $0xa0] sm:$0x3]  ;;  %v2994_v57 = vld [vmem:[%s2445_s24 + $0xa8] sm:$0xff] }
  0x4d   : > { %646 = vmatmul.mubr.f32.gmra.mrb[12].mxu0 %v2666_v53  ;;  %1955 = vmatprep.subr.bf16.mxu1 %v1954_v0  ;;  %v2912_v56 = vsel %vm309_vm1, %v393_v44, %v394_v45  ;;  %v2915_v0 = vld [vmem:[%s2445_s24 + $0x78] sm:$0xff]  ;;  %v281_v28 = vrot.slane %v215_v26, 1  ;;  %v283_v31 = vrot.slane %v2963_v29, 1  ;;  %v338_v38 = vrot.slane %v215_v26, 2 }
  0x4e   : > { %791 = vmatmul.mubr.f32.gmra.mrb[12].mxu1 %v2827_v60  ;;  %650 = vmatprep.mubr.f32.mxu0 %v2830_v61  ;;  %v2923_v5 = vsel %vm252_vm0, %v387_v30, %v389_v48  ;;  %v278_v7 = vrot.slane %v2915_v0, 1  ;;  %v2966_v30 = vld [vmem:[%s2445_s24 + $0x98] sm:$0xff]  ;;  %v340_v44 = vrot.slane %v2963_v29, 2  ;;  %s2089_s24 = sshll.u32 %s2181_s11, 4  ;;  %s2090_s24 = int_to_ptr.vmem [resolvable:$false] %s2089_s24 }
  0x4f   : > { %795 = vmatprep.mubr.f32.mxu1 %v2738_v21  ;;  %1925 = vmatpush3.bf16.msra.mxu0 %v1924_v12  ;;  %v2936_v12 = vsel %vm309_vm1, %v330_v3, %v331_v11  ;;  %v284_v40 = vrot.slane %v2966_v30, 1  ;;  %v2987_v45 = vsel %vm309_vm1, %v336_v27, %v338_v38  ;;  %v348_v38 = vrot.slane %v2766_v35, 2  ;;  %v531_v35 = vld [vmem:[%s3350_s1 + $0x418] sm:$0xff]  ;;  %s2091_s29 = scalar_lea.vmem %s2090_s24, 4096  ;;  %p2092_p4 = scmp.lt.s32.totalorder %s3289_s4, %s2090_s24 }
  0x50   : > { %1957 = vmatpush3.bf16.msra.mxu1 %v1956_v13  ;;  %1927 = vmatprep.subr.bf16.mxu0 %v1926_v16  ;;  %v2941_v13 = vsel %vm252_vm0, %v274_v62, %v276_v49  ;;  %v333_v16 = vrot.slane %v2844_v4, 2  ;;  %v335_v62 = vrot.slane %v2915_v0, 2  ;;  %v2959_v4 = vsel %vm252_vm0, %v278_v7, %v279_v20  ;;  %p2093_p5 = scmp.lt.s32.totalorder %s2091_s29, %s2085_s10 }
  0x51   : > { %651 = vmatmul.mubr.f32.gmra.mrb[14].mxu0 %v2670_v55  ;;  %1959 = vmatprep.subr.bf16.mxu1 %v1958_v36  ;;  %v2977_v36 = vsel %vm252_vm0, %v279_v20, %v281_v28  ;;  %v2990_v48 = vsel %vm252_vm0, %v283_v31, %v284_v40  ;;  %v341_v49 = vrot.slane %v2966_v30, 2  ;;  %v288_v20 = vrot.slane %v2994_v57, 1 }
  0x52   : > { %796 = vmatmul.mubr.f32.gmra.mrb[14].mxu1 %v2840_v2  ;;  %655 = vmatprep.mubr.f32.mxu0 %v2887_v32  ;;  %v2956_v3 = vsel %vm309_vm1, %v331_v11, %v333_v16  ;;  %v2974_v11 = vsel %vm309_vm1, %v335_v62, %v336_v27  ;;  %v343_v16 = vrot.slane %v218_v41, 2  ;;  %v345_v27 = vrot.slane %v2994_v57, 2  ;;  %p2094_p6 = por %p2093_p5, %p2092_p4 }
  0x53   : > { %800 = vmatprep.mubr.f32.mxu1 %v2915_v0  ;;  %1929 = vmatpush3.bf16.msra.mxu0 %v1928_v54  ;;  %v286_v54 = vrot.slane %v218_v41, 1  ;;  %v3017_v62 = vsel %vm252_vm0, %v288_v20, %v289_v37  ;;  %v346_v28 = vrot.slane %v2734_v17, 2  ;;  %v543_v20 = vld [vmem:[%s3350_s1 + $0x478] sm:$0xff] }
  0x54   : > { %1961 = vmatpush3.bf16.msra.mxu1 %v1960_v59  ;;  %1963 = vmatprep.subr.bf16.mxu0 %v2920_v1  ;;  %v3001_v59 = vsel %vm309_vm1, %v340_v44, %v341_v49  ;;  %v3012_v26 = vsel %vm309_vm1, %v341_v49, %v343_v16  ;;  %v532_v44 = vld [vmem:[%s3350_s1 + $0x420] sm:$0xff]  ;;  %v533_v49 = vld [vmem:[%s3350_s1 + $0x428] sm:$0xff]  ;;  %p2095_p7 = pnand %p2094_p6, %p2088_p2 }
  0x55   : > { %656 = vmatmul.mubr.f32.gmra.mrb[16].mxu0 %v2686_v63  ;;  %1994 = vmatprep.subr.bf16.mxu1 %v2920_v1  ;;  %v3004_v7 = vsel %vm252_vm0, %v284_v40, %v286_v54  ;;  %v3026_v31 = vsel %vm309_vm1, %v345_v27, %v346_v28  ;;  %v3034_v37 = vsel %vm309_vm1, %v346_v28, %v348_v38  ;;  %v530_v40 = vld [vmem:[%s3350_s1 + $0x410] sm:$0xff]  ;;  %v539_v54 = vld [vmem:[%s3350_s1 + $0x458] sm:$0xff]  ;;  %v541_v16 = vld [vmem:[%s3350_s1 + $0x468] sm:$0xff] }
  0x56   : > { %801 = vmatmul.mubr.f32.gmra.mrb[16].mxu1 %v2936_v12  ;;  %660 = vmatprep.mubr.f32.mxu0 %v2941_v13  ;;  %v1966_v41 = vpack.c.bf16 %v531_v35, %v530_v40 }
  0x57   : > { %805 = vmatprep.mubr.f32.mxu1 %v2918_v47 }
  0x59   : > { %661 = vmatmul.mubr.f32.gmra.mrb[18].mxu0 %v2738_v21 }
  0x5a   : > { %806 = vmatmul.mubr.f32.gmra.mrb[18].mxu1 %v2956_v3  ;;  %665 = vmatprep.mubr.f32.mxu0 %v2959_v4 }
  0x5b   : > { %810 = vmatprep.mubr.f32.mxu1 %v2963_v29 }
  0x5d   : > { %666 = vmatmul.mubr.f32.gmra.mrb[20].mxu0 %v2915_v0 }
  0x5e   : > { %811 = vmatmul.mubr.f32.gmra.mrb[20].mxu1 %v2974_v11  ;;  %670 = vmatprep.mubr.f32.mxu0 %v2977_v36 }
  0x5f   : > { %815 = vmatprep.mubr.f32.mxu1 %v2966_v30 }
  0x61   : > { %671 = vmatmul.mubr.f32.gmra.mrb[22].mxu0 %v2918_v47 }
  0x62   : > { %816 = vmatmul.mubr.f32.gmra.mrb[22].mxu1 %v2987_v45  ;;  %675 = vmatprep.mubr.f32.mxu0 %v2990_v48 }
  0x63   : > { %820 = vmatprep.mubr.f32.mxu1 %v2994_v57 }
  0x65   : > { %676 = vmatmul.mubr.f32.gmra.mrb[24].mxu0 %v2963_v29 }
  0x66   : > { %821 = vmatmul.mubr.f32.gmra.mrb[24].mxu1 %v3001_v59  ;;  %680 = vmatprep.mubr.f32.mxu0 %v3004_v7 }
  0x67   : > { %825 = vmatprep.mubr.f32.mxu1 %v2734_v17 }
  0x69   : > { %681 = vmatmul.mubr.f32.gmra.mrb[26].mxu0 %v2966_v30 }
  0x6a   : > { %826 = vmatmul.mubr.f32.gmra.mrb[26].mxu1 %v3012_v26  ;;  %685 = vmatprep.mubr.f32.mxu0 %v3017_v62 }
  0x6b   : > { %830 = vmatprep.mubr.f32.mxu1 %v2763_v34 }
  0x6d   : > { %686 = vmatmul.mubr.f32.gmra.mrb[28].mxu0 %v2994_v57 }
  0x6e   : > { %831 = vmatmul.mubr.f32.gmra.mrb[28].mxu1 %v3026_v31  ;;  %690 = vmatprep.mubr.f32.mxu0 %v2822_v58 }
  0x6f   : > { %835 = vmatprep.mubr.f32.mxu1 %v2776_v39 }
  0x71   : > { %691 = vmatmul.mubr.f32.gmra.mrb[30].mxu0 %v2734_v17 }
  0x72   : > { %836 = vmatmul.mubr.f32.gmra.mrb[30].mxu1 %v3034_v37  ;;  %905 = vmatprep.mubr.f32.mxu0 %v2611_v18  ;;  %v534_v18 = vld [vmem:[%s3350_s1 + $0x430] sm:$0xff] }
  0x73   : > { %1050 = vmatprep.mubr.f32.mxu1 %v2663_v51 }
  0x75   : > { %906 = vmatmul.mubr.f32.vlgmr.msra.gmra.mrb[32].mxu0 %v2580_v14  ;;  %v1970_v14 = vpack.c.bf16 %v533_v49, %v532_v44 }
  0x76   : > { %1051 = vmatmul.mubr.f32.vlgmr.msra.gmra.mrb[32].mxu1 %v2583_v15  ;;  %1965 = vmatpush3.bf16.msra.mxu0 %v2920_v1  ;;  %v535_v15 = vld [vmem:[%s3350_s1 + $0x438] sm:$0xff] }
  0x77   : > { %2002 = vmatpush3.bf16.msra.mxu1 %v2920_v1  ;;  %910 = vmatprep.mubr.f32.mxu0 %v2660_v50  ;;  %v1974_v50 = vpack.c.bf16 %v535_v15, %v534_v18  ;;  %v537_v1 = vld [vmem:[%s3350_s1 + $0x448] sm:$0xff] }
  0x78   : > { %1055 = vmatprep.mubr.f32.mxu1 %v2719_v9  ;;  %1967 = vmatprep.subr.bf16.mxu0 %v1966_v41 }
  0x79   : > { %911 = vmatmul.mubr.f32.gmra.mrb[34].mxu0 %v2622_v33  ;;  %1995 = vmatprep.subr.bf16.mxu1 %v1966_v41  ;;  %v536_v33 = vld [vmem:[%s3350_s1 + $0x440] sm:$0xff] }
  0x7a   : > { %1056 = vmatmul.mubr.f32.gmra.mrb[34].mxu1 %v2587_v19  ;;  %915 = vmatprep.mubr.f32.mxu0 %v2702_v52  ;;  %v1978_v19 = vpack.c.bf16 %v537_v1, %v536_v33 }
  0x7b   : > { %1060 = vmatprep.mubr.f32.mxu1 %v2787_v43  ;;  %1969 = vmatpush3.bf16.msra.mxu0 %v1966_v41 }
  0x7c   : > { %2003 = vmatpush3.bf16.msra.mxu1 %v1966_v41  ;;  %1971 = vmatprep.subr.bf16.mxu0 %v1970_v14 }
  0x7d   : > { %916 = vmatmul.mubr.f32.gmra.mrb[36].mxu0 %v2663_v51  ;;  %1996 = vmatprep.subr.bf16.mxu1 %v1970_v14  ;;  %v538_v51 = vld [vmem:[%s3350_s1 + $0x450] sm:$0xff] }
  0x7e   : > { %1061 = vmatmul.mubr.f32.gmra.mrb[36].mxu1 %v2666_v53  ;;  %920 = vmatprep.mubr.f32.mxu0 %v2784_v42  ;;  %v1982_v53 = vpack.c.bf16 %v539_v54, %v538_v51 }
  0x7f   : > { %1065 = vmatprep.mubr.f32.mxu1 %v2830_v61  ;;  %1973 = vmatpush3.bf16.msra.mxu0 %v1970_v14 }
  0x80   : > { %2004 = vmatpush3.bf16.msra.mxu1 %v1970_v14  ;;  %1975 = vmatprep.subr.bf16.mxu0 %v1974_v50 }
  0x81   : > { %921 = vmatmul.mubr.f32.gmra.mrb[38].mxu0 %v2719_v9  ;;  %1997 = vmatprep.subr.bf16.mxu1 %v1974_v50  ;;  %v540_v9 = vld [vmem:[%s3350_s1 + $0x460] sm:$0xff] }
  0x82   : > { %1066 = vmatmul.mubr.f32.gmra.mrb[38].mxu1 %v2670_v55  ;;  %925 = vmatprep.mubr.f32.mxu0 %v2827_v60  ;;  %v1986_v55 = vpack.c.bf16 %v541_v16, %v540_v9 }
  0x83   : > { %1070 = vmatprep.mubr.f32.mxu1 %v2887_v32  ;;  %1977 = vmatpush3.bf16.msra.mxu0 %v1974_v50 }
  0x84   : > { %2005 = vmatpush3.bf16.msra.mxu1 %v1974_v50  ;;  %1979 = vmatprep.subr.bf16.mxu0 %v1978_v19 }
  0x85   : > { %926 = vmatmul.mubr.f32.gmra.mrb[40].mxu0 %v2787_v43  ;;  %1998 = vmatprep.subr.bf16.mxu1 %v1978_v19  ;;  %v542_v43 = vld [vmem:[%s3350_s1 + $0x470] sm:$0xff] }
  0x86   : > { %1071 = vmatmul.mubr.f32.gmra.mrb[40].mxu1 %v2686_v63  ;;  %930 = vmatprep.mubr.f32.mxu0 %v2840_v2  ;;  %v1990_v63 = vpack.c.bf16 %v543_v20, %v542_v43 }
  0x87   : > { %1075 = vmatprep.mubr.f32.mxu1 %v2941_v13  ;;  %1981 = vmatpush3.bf16.msra.mxu0 %v1978_v19 }
  0x88   : > { %2006 = vmatpush3.bf16.msra.mxu1 %v1978_v19  ;;  %1983 = vmatprep.subr.bf16.mxu0 %v1982_v53 }
  0x89   : > { %931 = vmatmul.mubr.f32.gmra.mrb[42].mxu0 %v2830_v61  ;;  %1999 = vmatprep.subr.bf16.mxu1 %v1982_v53 }
  0x8a   : > { %1076 = vmatmul.mubr.f32.gmra.mrb[42].mxu1 %v2738_v21  ;;  %935 = vmatprep.mubr.f32.mxu0 %v2936_v12  ;;  %v3165_v21 = vld [vmem:[%s3351_s2] ss:$0 sm:$0xff] }
  0x8b   : > { %1080 = vmatprep.mubr.f32.mxu1 %v2959_v4  ;;  %1985 = vmatpush3.bf16.msra.mxu0 %v1982_v53 }
  0x8c   : > { %2007 = vmatpush3.bf16.msra.mxu1 %v1982_v53  ;;  %1987 = vmatprep.subr.bf16.mxu0 %v1986_v55 }
  0x8d   : > { %936 = vmatmul.mubr.f32.gmra.mrb[44].mxu0 %v2887_v32  ;;  %2000 = vmatprep.subr.bf16.mxu1 %v1986_v55 }
  0x8e   : > { %1081 = vmatmul.mubr.f32.gmra.mrb[44].mxu1 %v2915_v0  ;;  %940 = vmatprep.mubr.f32.mxu0 %v2956_v3 }
  0x8f   : > { %1085 = vmatprep.mubr.f32.mxu1 %v2977_v36  ;;  %1989 = vmatpush3.bf16.msra.mxu0 %v1986_v55 }
  0x90   : > { %2008 = vmatpush3.bf16.msra.mxu1 %v1986_v55  ;;  %1991 = vmatprep.subr.bf16.mxu0 %v1990_v63 }
  0x91   : > { %941 = vmatmul.mubr.f32.gmra.mrb[46].mxu0 %v2941_v13  ;;  %2001 = vmatprep.subr.bf16.mxu1 %v1990_v63 }
  0x92   : > { %1086 = vmatmul.mubr.f32.gmra.mrb[46].mxu1 %v2918_v47  ;;  %945 = vmatprep.mubr.f32.mxu0 %v2974_v11 }
  0x93   : > { %1090 = vmatprep.mubr.f32.mxu1 %v2990_v48  ;;  %1993 = vmatpush3.bf16.msra.mxu0 %v1990_v63 }
  0x94   : > { %2009 = vmatpush3.bf16.msra.mxu1 %v1990_v63 }
  0x95   : > { %946 = vmatmul.mubr.f32.gmra.mrb[48].mxu0 %v2959_v4 }
  0x96   : > { %1091 = vmatmul.mubr.f32.gmra.mrb[48].mxu1 %v2963_v29  ;;  %950 = vmatprep.mubr.f32.mxu0 %v2987_v45 }
  0x97   : > { %1095 = vmatprep.mubr.f32.mxu1 %v3004_v7 }
  0x99   : > { %951 = vmatmul.mubr.f32.gmra.mrb[50].mxu0 %v2977_v36 }
  0x9a   : > { %1096 = vmatmul.mubr.f32.gmra.mrb[50].mxu1 %v2966_v30  ;;  %955 = vmatprep.mubr.f32.mxu0 %v3001_v59 }
  0x9b   : > { %1100 = vmatprep.mubr.f32.mxu1 %v3017_v62 }
  0x9d   : > { %956 = vmatmul.mubr.f32.gmra.mrb[52].mxu0 %v2990_v48 }
  0x9e   : > { %1101 = vmatmul.mubr.f32.gmra.mrb[52].mxu1 %v2994_v57  ;;  %960 = vmatprep.mubr.f32.mxu0 %v3012_v26 }
  0x9f   : > { %1105 = vmatprep.mubr.f32.mxu1 %v2822_v58 }
  0xa1   : > { %961 = vmatmul.mubr.f32.gmra.mrb[54].mxu0 %v3004_v7 }
  0xa2   : > { %1106 = vmatmul.mubr.f32.gmra.mrb[54].mxu1 %v2734_v17  ;;  %965 = vmatprep.mubr.f32.mxu0 %v3026_v31 }
  0xa3   : > { %1110 = vmatprep.mubr.f32.mxu1 %v2856_v8 }
  0xa5   : > { %966 = vmatmul.mubr.f32.gmra.mrb[56].mxu0 %v3017_v62 }
  0xa6   : > { %1111 = vmatmul.mubr.f32.gmra.mrb[56].mxu1 %v2763_v34  ;;  %970 = vmatprep.mubr.f32.mxu0 %v3034_v37 }
  0xa7   : > { %1115 = vmatprep.mubr.f32.mxu1 %v2901_v22 }
  0xa9   : > { %971 = vmatmul.mubr.f32.gmra.mrb[58].mxu0 %v2822_v58 }
  0xaa   : > { %1116 = vmatmul.mubr.f32.gmra.mrb[58].mxu1 %v2776_v39  ;;  %975 = vmatprep.mubr.f32.mxu0 %v2859_v10 }
  0xab   : > { %1120 = vmatprep.mubr.f32.mxu1 %v2904_v46 }
  0xad   : > { %976 = vmatmul.mubr.f32.gmra.mrb[60].mxu0 %v2856_v8 }
  0xae   : > { %1121 = vmatmul.mubr.f32.gmra.mrb[60].mxu1 %v2868_v23  ;;  %980 = vmatprep.mubr.f32.mxu0 %v2907_v24 }
  0xaf   : > { %1125 = vmatprep.mubr.f32.mxu1 %v2923_v5 }
  0xb1   : > { %981 = vmatmul.mubr.f32.gmra.mrb[62].mxu0 %v2901_v22 }
  0xb2   : > { %1126 = vmatmul.mubr.f32.gmra.mrb[62].mxu1 %v2871_v25  ;;  %1810 = vmatprep.mubr.f32.mxu0 %v2702_v52 }
  0xb3   : > { %1822 = vmatprep.mubr.f32.mxu1 %v3001_v59 }
  0xb5   : > { %1811 = vmatmul.mubr.f32.vlgmr.msra.gmra.mrb[64].mxu0 %v2784_v42 }
  0xb6   : > { %1823 = vmatmul.mubr.f32.vlgmr.msra.gmra.mrb[64].mxu1 %v3012_v26  ;;  %1813 = vmatprep.mubr.f32.mxu0 %v2827_v60 }
  0xb7   : > { %1825 = vmatprep.mubr.f32.mxu1 %v3026_v31 }
  0xb9   : > { %1814 = vmatmul.mubr.f32.gmra.mrb[66].mxu0 %v2840_v2 }
  0xba   : > { %1826 = vmatmul.mubr.f32.gmra.mrb[66].mxu1 %v3034_v37  ;;  %1816 = vmatprep.mubr.f32.mxu0 %v2936_v12 }
  0xbb   : > { %1828 = vmatprep.mubr.f32.mxu1 %v2859_v10 }
  0xbd   : > { %1817 = vmatmul.mubr.f32.gmra.mrb[68].mxu0 %v2956_v3 }
  0xbe   : > { %1829 = vmatmul.mubr.f32.gmra.mrb[68].mxu1 %v2907_v24  ;;  %1819 = vmatprep.mubr.f32.mxu0 %v2974_v11 }
  0xbf   : > { %1831 = vmatprep.mubr.f32.mxu1 %v2912_v56 }
  0xc1   : > { %1820 = vmatmul.mubr.f32.gmra.mrb[70].mxu0 %v2987_v45 }
  0xc2   : > { %1832 = vmatmul.mubr.f32.gmra.mrb[70].mxu1 %v2927_v6 }
 0x108   : > { %v1458_v52 = vpop.f32.mrb[0].mxu0 }
 0x109   : > { %v1538_v17 = vpop.f32.mrb[0].mxu1  ;;  %v1459_v34 = vpop.f32.mrb[1].mxu0 }
 0x10a   : > { %v1460_v39 = vadd.f32 %v1459_v34, %v1458_v52  ;;  %v1539_v42 = vpop.f32.mrb[1].mxu1 }
 0x10b   : > { %v1540_v58 = vadd.f32 %v1539_v42, %v1538_v17 }
 0x10c   : > { %v618_v60 = vadd.f32 %v1460_v39, %v3165_v21  ;;  %v1461_v61 = vpop.f32.mrb[2].mxu0 }
 0x10d   : > { %v1541_v2 = vpop.f32.mrb[2].mxu1  ;;  %v1462_v8 = vpop.f32.mrb[3].mxu0 }
 0x10e   : > { %v3168_v10 = vadd.f32 %v1540_v58, %v618_v60  ;;  %v1463_v23 = vadd.f32 %v1462_v8, %v1461_v61  ;;  %v1542_v25 = vpop.f32.mrb[3].mxu1 }
 0x10f   : > { %v1543_v32 = vadd.f32 %v1542_v25, %v1541_v2 }
 0x110   : > { %v623_v22 = vadd.f32 %v1463_v23, %v3165_v21  ;;  %v1464_v46 = vpop.f32.mrb[4].mxu0 }
 0x111   : > { %v1544_v24 = vpop.f32.mrb[4].mxu1  ;;  %v1465_v56 = vpop.f32.mrb[5].mxu0 }
 0x112   : > { %v3171_v0 = vadd.f32 %v1543_v32, %v623_v22  ;;  %v1466_v47 = vadd.f32 %v1465_v56, %v1464_v46  ;;  %v1545_v5 = vpop.f32.mrb[5].mxu1 }
 0x113   : > { %v1546_v6 = vadd.f32 %v1545_v5, %v1544_v24 }
 0x114   : > { %v628_v12 = vadd.f32 %v1466_v47, %v3165_v21  ;;  %v1467_v13 = vpop.f32.mrb[6].mxu0 }
 0x115   : > { %v1547_v3 = vpop.f32.mrb[6].mxu1  ;;  %v1468_v4 = vpop.f32.mrb[7].mxu0 }
 0x116   : > { %v3174_v29 = vadd.f32 %v1546_v6, %v628_v12  ;;  %v1469_v30 = vadd.f32 %v1468_v4, %v1467_v13  ;;  %v1548_v11 = vpop.f32.mrb[7].mxu1 }
 0x117   : > { %v1549_v36 = vadd.f32 %v1548_v11, %v1547_v3 }
 0x118   : > { %v633_v45 = vadd.f32 %v1469_v30, %v3165_v21  ;;  %v1470_v48 = vpop.f32.mrb[8].mxu0 }
 0x119   : > { %v1550_v57 = vpop.f32.mrb[8].mxu1  ;;  %v1471_v59 = vpop.f32.mrb[9].mxu0 }
 0x11a   : > { %v3177_v7 = vadd.f32 %v1549_v36, %v633_v45  ;;  %v1472_v26 = vadd.f32 %v1471_v59, %v1470_v48  ;;  %v1551_v62 = vpop.f32.mrb[9].mxu1 }
 0x11b   : > { %v1552_v27 = vadd.f32 %v1551_v62, %v1550_v57 }
 0x11c   : > { %v638_v28 = vadd.f32 %v1472_v26, %v3165_v21  ;;  %v1473_v31 = vpop.f32.mrb[10].mxu0 }
 0x11d   : > { %v1553_v38 = vpop.f32.mrb[10].mxu1  ;;  %v1474_v37 = vpop.f32.mrb[11].mxu0 }
 0x11e   : > { %v3180_v40 = vadd.f32 %v1552_v27, %v638_v28  ;;  %v1475_v35 = vadd.f32 %v1474_v37, %v1473_v31  ;;  %v1554_v41 = vpop.f32.mrb[11].mxu1 }
 0x11f   : > { %v1555_v44 = vadd.f32 %v1554_v41, %v1553_v38 }
 0x120   : > { %v643_v49 = vadd.f32 %v1475_v35, %v3165_v21  ;;  %v1476_v14 = vpop.f32.mrb[12].mxu0 }
 0x121   : > { %v1556_v18 = vpop.f32.mrb[12].mxu1  ;;  %v1477_v15 = vpop.f32.mrb[13].mxu0 }
 0x122   : > { %v3183_v50 = vadd.f32 %v1555_v44, %v643_v49  ;;  %v1478_v33 = vadd.f32 %v1477_v15, %v1476_v14  ;;  %v1557_v1 = vpop.f32.mrb[13].mxu1 }
 0x123   : > { %v1558_v19 = vadd.f32 %v1557_v1, %v1556_v18 }
 0x124   : > { %v648_v51 = vadd.f32 %v1478_v33, %v3165_v21  ;;  %v1479_v54 = vpop.f32.mrb[14].mxu0 }
 0x125   : > { %v1559_v53 = vpop.f32.mrb[14].mxu1  ;;  %v1480_v9 = vpop.f32.mrb[15].mxu0 }
 0x126   : > { %v3186_v16 = vadd.f32 %v1558_v19, %v648_v51  ;;  %v1481_v55 = vadd.f32 %v1480_v9, %v1479_v54  ;;  %v1560_v43 = vpop.f32.mrb[15].mxu1 }
 0x127   : > { %v1561_v20 = vadd.f32 %v1560_v43, %v1559_v53 }
 0x128   : > { %v653_v63 = vadd.f32 %v1481_v55, %v3165_v21  ;;  %v1482_v52 = vpop.f32.mrb[16].mxu0 }
 0x129   : > { %v1562_v17 = vpop.f32.mrb[16].mxu1  ;;  %v1483_v34 = vpop.f32.mrb[17].mxu0 }
 0x12a   : > { %v3189_v39 = vadd.f32 %v1561_v20, %v653_v63  ;;  %v1484_v42 = vadd.f32 %v1483_v34, %v1482_v52  ;;  %v1563_v58 = vpop.f32.mrb[17].mxu1 }
 0x12b   : > { %v1564_v60 = vadd.f32 %v1563_v58, %v1562_v17 }
 0x12c   : > { %v658_v61 = vadd.f32 %v1484_v42, %v3165_v21  ;;  %v1485_v2 = vpop.f32.mrb[18].mxu0 }
 0x12d   : > { %v1565_v8 = vpop.f32.mrb[18].mxu1  ;;  %v1486_v23 = vpop.f32.mrb[19].mxu0 }
 0x12e   : > { %v3192_v25 = vadd.f32 %v1564_v60, %v658_v61  ;;  %v1487_v32 = vadd.f32 %v1486_v23, %v1485_v2  ;;  %v1566_v22 = vpop.f32.mrb[19].mxu1 }
 0x12f   : > { %v1567_v46 = vadd.f32 %v1566_v22, %v1565_v8 }
 0x130   : > { %v663_v24 = vadd.f32 %v1487_v32, %v3165_v21  ;;  %v1488_v56 = vpop.f32.mrb[20].mxu0 }
 0x131   : > { %v1568_v47 = vpop.f32.mrb[20].mxu1  ;;  %v1489_v5 = vpop.f32.mrb[21].mxu0 }
 0x132   : > { %v3195_v6 = vadd.f32 %v1567_v46, %v663_v24  ;;  %v1490_v12 = vadd.f32 %v1489_v5, %v1488_v56  ;;  %v1569_v13 = vpop.f32.mrb[21].mxu1 }
 0x133   : > { %v1570_v3 = vadd.f32 %v1569_v13, %v1568_v47 }
 0x134   : > { %v668_v4 = vadd.f32 %v1490_v12, %v3165_v21  ;;  %v1491_v30 = vpop.f32.mrb[22].mxu0 }
 0x135   : > { %v1571_v11 = vpop.f32.mrb[22].mxu1  ;;  %v1492_v36 = vpop.f32.mrb[23].mxu0 }
 0x136   : > { %v3198_v45 = vadd.f32 %v1570_v3, %v668_v4  ;;  %v1493_v48 = vadd.f32 %v1492_v36, %v1491_v30  ;;  %v1572_v57 = vpop.f32.mrb[23].mxu1 }
 0x137   : > { %v1573_v59 = vadd.f32 %v1572_v57, %v1571_v11 }
 0x138   : > { %v673_v26 = vadd.f32 %v1493_v48, %v3165_v21  ;;  %v1494_v62 = vpop.f32.mrb[24].mxu0 }
 0x139   : > { %v1574_v27 = vpop.f32.mrb[24].mxu1  ;;  %v1495_v28 = vpop.f32.mrb[25].mxu0 }
 0x13a   : > { %v3201_v31 = vadd.f32 %v1573_v59, %v673_v26  ;;  %v1496_v38 = vadd.f32 %v1495_v28, %v1494_v62  ;;  %v1575_v37 = vpop.f32.mrb[25].mxu1 }
 0x13b   : > { %v1576_v35 = vadd.f32 %v1575_v37, %v1574_v27 }
 0x13c   : > { %v678_v41 = vadd.f32 %v1496_v38, %v3165_v21  ;;  %v1497_v44 = vpop.f32.mrb[26].mxu0 }
 0x13d   : > { %v1577_v49 = vpop.f32.mrb[26].mxu1  ;;  %v1498_v14 = vpop.f32.mrb[27].mxu0 }
 0x13e   : > { %v3204_v18 = vadd.f32 %v1576_v35, %v678_v41  ;;  %v1499_v15 = vadd.f32 %v1498_v14, %v1497_v44  ;;  %v1578_v33 = vpop.f32.mrb[27].mxu1 }
 0x13f   : > { %v1579_v1 = vadd.f32 %v1578_v33, %v1577_v49 }
 0x140   : > { %v683_v19 = vadd.f32 %v1499_v15, %v3165_v21  ;;  %v1500_v51 = vpop.f32.mrb[28].mxu0 }
 0x141   : > { %v1580_v54 = vpop.f32.mrb[28].mxu1  ;;  %v1501_v53 = vpop.f32.mrb[29].mxu0 }
 0x142   : > { %v3207_v9 = vadd.f32 %v1579_v1, %v683_v19  ;;  %v1502_v55 = vadd.f32 %v1501_v53, %v1500_v51  ;;  %v1581_v43 = vpop.f32.mrb[29].mxu1 }
 0x143   : > { %v1582_v20 = vadd.f32 %v1581_v43, %v1580_v54 }
 0x144   : > { %v688_v63 = vadd.f32 %v1502_v55, %v3165_v21  ;;  %v1503_v52 = vpop.f32.mrb[30].mxu0 }
 0x145   : > { %v1583_v17 = vpop.f32.mrb[30].mxu1  ;;  %v1504_v34 = vpop.f32.mrb[31].mxu0 }
 0x146   : > { %v3210_v42 = vadd.f32 %v1582_v20, %v688_v63  ;;  %v1505_v58 = vadd.f32 %v1504_v34, %v1503_v52  ;;  %v1584_v60 = vpop.f32.mrb[31].mxu1 }
 0x147   : > { %v1585_v61 = vadd.f32 %v1584_v60, %v1583_v17 }
 0x148   : > { %v693_v2 = vadd.f32 %v1505_v58, %v3165_v21  ;;  %v1618_v8 = vpop.f32.mrb[32].mxu0 }
 0x149   : > { %v1698_v23 = vpop.f32.mrb[32].mxu1  ;;  %v1619_v32 = vpop.f32.mrb[33].mxu0 }
 0x14a   : > { %v3213_v22 = vadd.f32 %v1585_v61, %v693_v2  ;;  %v1620_v46 = vadd.f32 %v1619_v32, %v1618_v8  ;;  %v1699_v24 = vpop.f32.mrb[33].mxu1 }
 0x14b   : > { %v1700_v56 = vadd.f32 %v1699_v24, %v1698_v23 }
 0x14c   : > { %v908_v47 = vadd.f32 %v1620_v46, %v3168_v10  ;;  %v1621_v5 = vpop.f32.mrb[34].mxu0 }
 0x14d   : > { %v1701_v12 = vpop.f32.mrb[34].mxu1  ;;  %v1622_v13 = vpop.f32.mrb[35].mxu0 }
 0x14e   : > { %v1623_v3 = vadd.f32 %v1622_v13, %v1621_v5  ;;  %v1702_v4 = vpop.f32.mrb[35].mxu1  ;;  %v3216_v30 = vadd.f32 %v1700_v56, %v908_v47 }
 0x14f   : > { %v1703_v11 = vadd.f32 %v1702_v4, %v1701_v12 }
 0x150   : > { %v913_v21 = vadd.f32 %v1623_v3, %v3171_v0  ;;  %v1624_v36 = vpop.f32.mrb[36].mxu0 }
 0x151   : > { %v1704_v48 = vpop.f32.mrb[36].mxu1  ;;  %v1625_v57 = vpop.f32.mrb[37].mxu0 }
 0x152   : > { %v1626_v59 = vadd.f32 %v1625_v57, %v1624_v36  ;;  %v1705_v26 = vpop.f32.mrb[37].mxu1  ;;  %v3219_v62 = vadd.f32 %v1703_v11, %v913_v21 }
 0x153   : > { %v1706_v27 = vadd.f32 %v1705_v26, %v1704_v48 }
 0x154   : > { %v918_v10 = vadd.f32 %v1626_v59, %v3174_v29  ;;  %v1627_v28 = vpop.f32.mrb[38].mxu0 }
 0x155   : > { %v1707_v38 = vpop.f32.mrb[38].mxu1  ;;  %v1628_v37 = vpop.f32.mrb[39].mxu0 }
 0x156   : > { %v1629_v35 = vadd.f32 %v1628_v37, %v1627_v28  ;;  %v1708_v41 = vpop.f32.mrb[39].mxu1  ;;  %v3222_v44 = vadd.f32 %v1706_v27, %v918_v10 }
 0x157   : > { %v1709_v49 = vadd.f32 %v1708_v41, %v1707_v38 }
 0x158   : > { %v923_v0 = vadd.f32 %v1629_v35, %v3177_v7  ;;  %v1630_v14 = vpop.f32.mrb[40].mxu0 }
 0x159   : > { %v1710_v15 = vpop.f32.mrb[40].mxu1  ;;  %v1631_v33 = vpop.f32.mrb[41].mxu0 }
 0x15a   : > { %v1632_v1 = vadd.f32 %v1631_v33, %v1630_v14  ;;  %v1711_v19 = vpop.f32.mrb[41].mxu1  ;;  %v3225_v51 = vadd.f32 %v1709_v49, %v923_v0 }
 0x15b   : > { %v1712_v54 = vadd.f32 %v1711_v19, %v1710_v15 }
 0x15c   : > { %v928_v29 = vadd.f32 %v1632_v1, %v3180_v40  ;;  %v1633_v53 = vpop.f32.mrb[42].mxu0 }
 0x15d   : > { %v1713_v55 = vpop.f32.mrb[42].mxu1  ;;  %v1634_v43 = vpop.f32.mrb[43].mxu0 }
 0x15e   : > { %v1635_v20 = vadd.f32 %v1634_v43, %v1633_v53  ;;  %v1714_v63 = vpop.f32.mrb[43].mxu1  ;;  %v3228_v52 = vadd.f32 %v1712_v54, %v928_v29 }
 0x15f   : > { %v1715_v17 = vadd.f32 %v1714_v63, %v1713_v55 }
 0x160   : > { %v933_v7 = vadd.f32 %v1635_v20, %v3183_v50  ;;  %v1636_v34 = vpop.f32.mrb[44].mxu0 }
 0x161   : > { %v1716_v58 = vpop.f32.mrb[44].mxu1  ;;  %v1637_v60 = vpop.f32.mrb[45].mxu0 }
 0x162   : > { %v1638_v61 = vadd.f32 %v1637_v60, %v1636_v34  ;;  %v1717_v2 = vpop.f32.mrb[45].mxu1  ;;  %v3231_v8 = vadd.f32 %v1715_v17, %v933_v7 }
 0x163   : > { %v1718_v23 = vadd.f32 %v1717_v2, %v1716_v58 }
 0x164   : > { %v938_v40 = vadd.f32 %v1638_v61, %v3186_v16  ;;  %v1639_v32 = vpop.f32.mrb[46].mxu0 }
 0x165   : > { %v1719_v46 = vpop.f32.mrb[46].mxu1  ;;  %v1640_v24 = vpop.f32.mrb[47].mxu0 }
 0x166   : > { %v1641_v56 = vadd.f32 %v1640_v24, %v1639_v32  ;;  %v1720_v47 = vpop.f32.mrb[47].mxu1  ;;  %v3234_v5 = vadd.f32 %v1718_v23, %v938_v40 }
 0x167   : > { %v1721_v12 = vadd.f32 %v1720_v47, %v1719_v46 }
 0x168   : > { %v943_v50 = vadd.f32 %v1641_v56, %v3189_v39  ;;  %v1642_v13 = vpop.f32.mrb[48].mxu0 }
 0x169   : > { %v1722_v3 = vpop.f32.mrb[48].mxu1  ;;  %v1643_v4 = vpop.f32.mrb[49].mxu0 }
 0x16a   : > { %v1644_v11 = vadd.f32 %v1643_v4, %v1642_v13  ;;  %v1723_v21 = vpop.f32.mrb[49].mxu1  ;;  %v3237_v36 = vadd.f32 %v1721_v12, %v943_v50 }
 0x16b   : > { %v1724_v48 = vadd.f32 %v1723_v21, %v1722_v3 }
 0x16c   : > { %v948_v16 = vadd.f32 %v1644_v11, %v3192_v25  ;;  %v1645_v57 = vpop.f32.mrb[50].mxu0 }
 0x16d   : > { %v1725_v59 = vpop.f32.mrb[50].mxu1  ;;  %v1646_v26 = vpop.f32.mrb[51].mxu0 }
 0x16e   : > { %v1647_v27 = vadd.f32 %v1646_v26, %v1645_v57  ;;  %v1726_v10 = vpop.f32.mrb[51].mxu1  ;;  %v1093_v28 = vadd.f32 %v1724_v48, %v948_v16 }
 0x16f   : > { %v1727_v38 = vadd.f32 %v1726_v10, %v1725_v59 }
 0x170   : > { %v953_v37 = vadd.f32 %v1647_v27, %v3195_v6  ;;  %v1648_v39 = vpop.f32.mrb[52].mxu0 }
 0x171   : > { %v1728_v35 = vpop.f32.mrb[52].mxu1  ;;  %v1649_v41 = vpop.f32.mrb[53].mxu0 }
 0x172   : > { %v1650_v49 = vadd.f32 %v1649_v41, %v1648_v39  ;;  %v1729_v0 = vpop.f32.mrb[53].mxu1  ;;  %v1098_v14 = vadd.f32 %v1727_v38, %v953_v37 }
 0x173   : > { %v1730_v15 = vadd.f32 %v1729_v0, %v1728_v35 }
 0x174   : > { %v958_v33 = vadd.f32 %v1650_v49, %v3198_v45  ;;  %v1651_v1 = vpop.f32.mrb[54].mxu0 }
 0x175   : > { %v1731_v25 = vpop.f32.mrb[54].mxu1  ;;  %v1652_v19 = vpop.f32.mrb[55].mxu0 }
 0x176   : > { %v1653_v54 = vadd.f32 %v1652_v19, %v1651_v1  ;;  %v1732_v29 = vpop.f32.mrb[55].mxu1  ;;  %v3242_v53 = vadd.f32 %v1730_v15, %v958_v33 }
 0x177   : > { %v1733_v55 = vadd.f32 %v1732_v29, %v1731_v25 }
 0x178   : > { %v963_v43 = vadd.f32 %v1653_v54, %v3201_v31  ;;  %v1654_v6 = vpop.f32.mrb[56].mxu0 }
 0x179   : > { %v1734_v20 = vpop.f32.mrb[56].mxu1  ;;  %v1655_v63 = vpop.f32.mrb[57].mxu0 }
 0x17a   : > { %v1656_v17 = vadd.f32 %v1655_v63, %v1654_v6  ;;  %v1735_v7 = vpop.f32.mrb[57].mxu1  ;;  %v1108_v34 = vadd.f32 %v1733_v55, %v963_v43 }
 0x17b   : > { %v1736_v58 = vadd.f32 %v1735_v7, %v1734_v20 }
 0x17c   : > { %v968_v60 = vadd.f32 %v1656_v17, %v3204_v18  ;;  %v1657_v45 = vpop.f32.mrb[58].mxu0 }
 0x17d   : > { %v1737_v61 = vpop.f32.mrb[58].mxu1  ;;  %v1658_v2 = vpop.f32.mrb[59].mxu0 }
 0x17e   : > { %v1659_v23 = vadd.f32 %v1658_v2, %v1657_v45  ;;  %v1738_v40 = vpop.f32.mrb[59].mxu1  ;;  %v3246_v32 = vadd.f32 %v1736_v58, %v968_v60 }
 0x17f   : > { %v1739_v46 = vadd.f32 %v1738_v40, %v1737_v61 }
 0x180   : > { %v973_v31 = vadd.f32 %v1659_v23, %v3207_v9  ;;  %v1660_v24 = vpop.f32.mrb[60].mxu0 }
 0x181   : > { %v1740_v56 = vpop.f32.mrb[60].mxu1  ;;  %v1661_v47 = vpop.f32.mrb[61].mxu0 }
 0x182   : > { %v1662_v12 = vadd.f32 %v1661_v47, %v1660_v24  ;;  %v1741_v50 = vpop.f32.mrb[61].mxu1  ;;  %v1118_v13 = vadd.f32 %v1739_v46, %v973_v31 }
 0x183   : > { %v1742_v3 = vadd.f32 %v1741_v50, %v1740_v56 }
 0x184   : > { %v978_v18 = vadd.f32 %v1662_v12, %v3210_v42  ;;  %v1663_v4 = vpop.f32.mrb[62].mxu0 }
 0x185   : > { %v1743_v11 = vpop.f32.mrb[62].mxu1  ;;  %v1664_v21 = vpop.f32.mrb[63].mxu0 }
 0x186   : > { %v1665_v48 = vadd.f32 %v1664_v21, %v1663_v4  ;;  %v1744_v16 = vpop.f32.mrb[63].mxu1  ;;  %v3251_v57 = vadd.f32 %v1742_v3, %v978_v18 }
 0x187   : > { %v1745_v59 = vadd.f32 %v1744_v16, %v1743_v11 }
 0x188   : > { %v983_v9 = vadd.f32 %v1665_v48, %v3213_v22  ;;  %v1812_v26 = vpop.f32.mrb[64].mxu0 }
 0x189   : > { %v1203_v27 = vadd.f32 %v1812_v26, %v3219_v62  ;;  %v1824_v10 = vpop.f32.mrb[64].mxu1  ;;  %v1197_v38 = vpop.f32.mrb[65].mxu0 }
 0x18a   : > { %v1243_v37 = vadd.f32 %v1824_v10, %v1098_v14  ;;  %v1198_v42 = vadd.f32 %v1197_v38, %v3216_v30  ;;  %v1237_v39 = vpop.f32.mrb[65].mxu1  ;;  %v1128_v35 = vadd.f32 %v1745_v59, %v983_v9 }
 0x18b   : > { %v1277_v41 = vmax.f32 %v1203_v27, 0.0  ;;  %v1238_v49 = vadd.f32 %v1237_v39, %v1093_v28 }
 0x18c   : > { %v1285_v0 = vmax.f32 %v1243_v37, 0.0  ;;  %v1276_v15 = vmax.f32 %v1198_v42, 0.0  ;;  %v1815_v33 = vpop.f32.mrb[66].mxu0 }
 0x18d   : > { %1293 = vst [vmem:[%s3258_s28 + $0x8] sm:$0xff] %v1277_v41  ;;  %v1284_v22 = vmax.f32 %v1238_v49, 0.0  ;;  %v1213_v62 = vadd.f32 %v1815_v33, %v3225_v51  ;;  %v1827_v30 = vpop.f32.mrb[66].mxu1  ;;  %v1207_v14 = vpop.f32.mrb[67].mxu0 }
 0x18e   : > { %1301 = vst [vmem:[%s3258_s28 + $0x48] sm:$0xff] %v1285_v0  ;;  %1292 = vst [vmem:[%s3258_s28] sm:$0xff] %v1276_v15  ;;  %v1253_v28 = vadd.f32 %v1827_v30, %v1108_v34  ;;  %v1208_v1 = vadd.f32 %v1207_v14, %v3222_v44  ;;  %v1247_v25 = vpop.f32.mrb[67].mxu1 }
 0x18f   : > { %1300 = vst [vmem:[%s3258_s28 + $0x40] sm:$0xff] %v1284_v22  ;;  %v1279_v19 = vmax.f32 %v1213_v62, 0.0  ;;  %v1248_v54 = vadd.f32 %v1247_v25, %v3242_v53 }
 0x190   : > { %v1287_v29 = vmax.f32 %v1253_v28, 0.0  ;;  %v1278_v51 = vmax.f32 %v1208_v1, 0.0  ;;  %v1818_v55 = vpop.f32.mrb[68].mxu0 }
 0x191   : > { %1295 = vst [vmem:[%s3258_s28 + $0x18] sm:$0xff] %v1279_v19  ;;  %v1286_v43 = vmax.f32 %v1248_v54, 0.0  ;;  %v1223_v6 = vadd.f32 %v1818_v55, %v3231_v8  ;;  %v1830_v20 = vpop.f32.mrb[68].mxu1  ;;  %v1217_v63 = vpop.f32.mrb[69].mxu0 }
 0x192   : > { %1303 = vst [vmem:[%s3258_s28 + $0x58] sm:$0xff] %v1287_v29  ;;  %1294 = vst [vmem:[%s3258_s28 + $0x10] sm:$0xff] %v1278_v51  ;;  %v1263_v44 = vadd.f32 %v1830_v20, %v1118_v13  ;;  %v1218_v17 = vadd.f32 %v1217_v63, %v3228_v52  ;;  %v1257_v53 = vpop.f32.mrb[69].mxu1 }
 0x193   : > { %1302 = vst [vmem:[%s3258_s28 + $0x50] sm:$0xff] %v1286_v43  ;;  %v1281_v7 = vmax.f32 %v1223_v6, 0.0  ;;  %v1258_v34 = vadd.f32 %v1257_v53, %v3246_v32 }
 0x194   : > { %v1289_v58 = vmax.f32 %v1263_v44, 0.0  ;;  %v1280_v60 = vmax.f32 %v1218_v17, 0.0  ;;  %v1821_v8 = vpop.f32.mrb[70].mxu0 }
 0x195   : > { %1297 = vst [vmem:[%s3258_s28 + $0x28] sm:$0xff] %v1281_v7  ;;  %v1288_v45 = vmax.f32 %v1258_v34, 0.0  ;;  %v1233_v61 = vadd.f32 %v1821_v8, %v3237_v36  ;;  %v1833_v2 = vpop.f32.mrb[70].mxu1  ;;  %v1227_v23 = vpop.f32.mrb[71].mxu0 }
 0x196   : > { %1305 = vst [vmem:[%s3258_s28 + $0x68] sm:$0xff] %v1289_v58  ;;  %1296 = vst [vmem:[%s3258_s28 + $0x20] sm:$0xff] %v1280_v60  ;;  %v1273_v52 = vadd.f32 %v1833_v2, %v1128_v35  ;;  %v1228_v40 = vadd.f32 %v1227_v23, %v3234_v5  ;;  %v1267_v32 = vpop.f32.mrb[71].mxu1 }
 0x197   : > { %1304 = vst [vmem:[%s3258_s28 + $0x60] sm:$0xff] %v1288_v45  ;;  %v1283_v46 = vmax.f32 %v1233_v61, 0.0  ;;  %v1268_v36 = vadd.f32 %v1267_v32, %v3251_v57 }
 0x198   : > { %v1291_v31 = vmax.f32 %v1273_v52, 0.0  ;;  %v1282_v24 = vmax.f32 %v1228_v40, 0.0 }
 0x199   : > { %1299 = vst [vmem:[%s3258_s28 + $0x38] sm:$0xff] %v1283_v46  ;;  %v1290_v5 = vmax.f32 %v1268_v36, 0.0 }
 0x19a   : > { %1307 = vst [vmem:[%s3258_s28 + $0x78] sm:$0xff] %v1291_v31  ;;  %1298 = vst [vmem:[%s3258_s28 + $0x30] sm:$0xff] %v1282_v24 }
 0x19b   : > { %1306 = vst [vmem:[%s3258_s28 + $0x70] sm:$0xff] %v1290_v5 }
 0x19c   : > { %2098 = shalt.err (!%p2095_p7)
}
 0x19d   : > { %s2099_s20 = scalar_lea.hbm %s3287_s27, 2048  ;;  %s2103_s6 = scalar_lea.hbm %s3352_s3, 8192 }
 0x19e   : > { %p2100_p9 = scmp.ne.s32.totalorder %s3287_s27, %s2099_s20  ;;  %p2104_p12 = scmp.lt.u32.totalorder %s3287_s27, %s3352_s3 }
 0x19f   : > { %p2105_p13 = scmp.lt.u32.totalorder %s2103_s6, %s2099_s20  ;;  %p2107_p1 = scmp.lt.u32.totalorder %s2099_s20, %s3287_s27 }
 0x1a0   : > { %p2101_p10 = pnand %p2100_p9, %p2255_p3 }
 0x1a1   : > { %p2106_p0 = por %p2105_p13, %p2104_p12 }
 0x1a2   : > { %p2102_p11 = pneg %p2101_p10 }
 0x1a3   : > { %p2108_p2 = por %p2107_p1, %p2106_p0 }
 0x1a5   : > { %p2109_p4 = pnand %p2108_p2, %p2102_p11 }
 0x1a7   : > { %2112 = shalt.err (!%p2109_p4)
}
 0x1a8   : > { %s2182_s16 = smov 128   ;;  %s2183_s5 = smov 8  }
 0x1a9   : > { %2012 = dma.vmem_to_hbm [thread:$0]  (%p2255_p3), %s3289_s4, 2048, %s3287_s27, %s3297_s9, %s2182_s16, %s2182_s16, %s2183_s5  }
 0x1aa PF: > { %p2018_p5 = scmp.ge.s32.totalorder %s2179_s19, 2  ;;  %s1340_s8 = sand.u32 1, %s2151_s12  }
 0x1ab   : > { %s1341_s10 = scalar_lea.sflag [#allocation3], %s1340_s8 }
 0x1ac   : > { %p2015_p6 = pnand %p2018_p5, %p2264_p8 }
 0x1ae   : > { %2146 = dma.done.wait (!%p2015_p6), %s1341_s10, 2048  }
 0x1af   : > { %2148 = vsyncadd (!%p2015_p6), %s1341_s10, 4294965248  ;;  %s16_s19 = sadd.s32 1, %s2179_s19   ;;  %s3355_s12 = smov %s2155_s13 }
 0x1b0   : > { %p13_p7 = scmp.ge.s32.totalorder %s16_s19, 6   ;;  %s3356_s13 = smov %s2159_s14 }
 0x1b1   : > { %s3357_s14 = smov %s2273_s30  ;;  %s3358_s15 = smov %s2171_s17 }
 0x1b2   : > { %s3359_s16 = smov %s2175_s18  ;;  %s3360_s17 = smov %s3363_s22 }
 0x1b3   : > { %s3361_s18 = smov %s3367_s23  ;;  %15 = sbr.rel (!%p13_p7) target bundleno = 5 (0x5), region = 67 }
 0x1ba   :  { %1346 = vsyncpa [#allocation3], 1 }
 0x1bb   :  { %1348 = vsyncpa [#allocation3 + $0x1], 1 }

</bundles_post_ra>
